<compile_context>
chip_gen: v5e
topology: v5e:2x2
jax: 0.10.0
libtpu: 0.0.40
codegen_flags: <defaults>
</compile_context>

<pallas_src>
import functools

import jax
import jax.numpy as jnp
from jax import lax
from jax.experimental import pallas as pl
from jax.experimental.pallas import tpu as pltpu


def _temporal_conv_kernel(cw_ref, cb_ref, mw_ref, mb_ref, x_ref, o_ref,
                          *, kt, dilation, c_in, c_out, t_tile,
                          single_time_tile):
    # SMEM scalar params:
    #   cw_ref: (c_out*c_in*kt,)  temporal-conv weights, index (co*c_in + ci)*kt + k
    #   cb_ref: (c_out,)          temporal-conv bias
    #   mw_ref: (c_out*c_in,)     1x1 "modify" weights (only used when c_in > c_out)
    #   mb_ref: (c_out,)          1x1 "modify" bias
    # VMEM blocks:
    #   x_ref:  (b_tile, c_in, T, N)        full time axis of the current batch tile
    #   o_ref:  (b_tile, c_out, t_tile, N)  current output time tile
    b_tile = o_ref.shape[0]
    n = o_ref.shape[3]

    if single_time_tile:
        # Whole cropped time axis in one tile -> fully static window slices.
        t0 = 0
    else:
        t0 = pl.program_id(1) * t_tile
        if t_tile % 8 == 0:
            t0 = pl.multiple_of(t0, 8)

    # Load the kt time-shifted (b_tile, t_tile, N) windows for every input channel
    # once.  They feed both the conv taps and the fused residual branch (whose time
    # offset dilation*(kt-1) is exactly tap kt-1's offset).
    xs = [[x_ref[:, ci, pl.ds(t0 + k * dilation, t_tile), :] for k in range(kt)]
          for ci in range(c_in)]

    for co in range(c_out):
        # Temporal conv as kt*c_in scalar-weight FMAs on (b_tile, t_tile, N) vregs.
        # Pure VPU path: at these channel counts an MXU matmul would be ~97% idle.
        acc = jnp.full((b_tile, t_tile, n), cb_ref[co], dtype=jnp.float32)
        for ci in range(c_in):
            for k in range(kt):
                acc = acc + xs[ci][k] * cw_ref[(co * c_in + ci) * kt + k]

        # Fused residual branch, read from the already-resident x tile.
        if c_in > c_out:
            # 1x1 "modify" conv on the residual time window.
            res = jnp.full((b_tile, t_tile, n), mb_ref[co], dtype=jnp.float32)
            for ci in range(c_in):
                res = res + xs[ci][kt - 1] * mw_ref[co * c_in + ci]
            acc = acc + res
        elif co < c_in:
            # identity (c_in == c_out) or existing channel of the zero-padded residual.
            acc = acc + xs[co][kt - 1]
        # else: zero-padded residual channel -> nothing to add.

        o_ref[:, co, :, :] = jnp.maximum(acc, 0.0).astype(o_ref.dtype)


def _pick_t_tile(t_out, n_route, c_out, *, target_bytes=2 << 20):
    """Largest time-tile that divides t_out, is sublane-friendly (mult. of 8 or
    full), and keeps a double-buffered f32 output block under target_bytes."""
    max_rows = max(8, target_bytes // max(1, 2 * 4 * c_out * n_route))
    if t_out <= max_rows:
        return t_out
    start = int(max_rows) - int(max_rows) % 8
    for cand in range(start, 7, -8):
        if t_out % cand == 0:
            return cand
    return t_out  # fall back to a single tile per batch tile


def _pick_b_tile(batch, c_in, c_out, t_full, t_tile, n_route,
                 *, target_bytes=8 << 20):
    """Largest batch-tile dividing `batch` whose double-buffered f32 input +
    output blocks stay under target_bytes (keeps headroom in scoped VMEM)."""
    per_b = 2 * 4 * (c_in * t_full * n_route + c_out * t_tile * n_route)
    max_b = max(1, target_bytes // max(1, per_b))
    if batch <= max_b:
        return batch
    for cand in range(int(max_b), 0, -1):
        if batch % cand == 0:
            return cand
    return 1


def temporal_conv_layer(x_nchw, conv_w, conv_b, modify_w, modify_b,
                        *, kt, dilation, c_in, c_out):
    """x_nchw: [B, c_in, T, N] float32 -> [B, c_out, T - dilation*(kt-1), N] (relu path)."""
    B, _, T, N = x_nchw.shape
    t_out = T - dilation * (kt - 1)
    t_tile = _pick_t_tile(t_out, N, c_out)
    n_t_tiles = t_out // t_tile
    b_tile = _pick_b_tile(B, c_in, c_out, T, t_tile, N)
    n_b_tiles = B // b_tile
    single_time_tile = (n_t_tiles == 1)

    # Tiny parameter tensors -> flat f32 arrays read as scalars from SMEM.
    cw_flat = conv_w[:, :, :, 0].reshape(c_out * c_in * kt)
    mw_flat = modify_w[:, :, 0, 0].reshape(c_out * c_in)

    kernel = functools.partial(_temporal_conv_kernel, kt=kt, dilation=dilation,
                               c_in=c_in, c_out=c_out, t_tile=t_tile,
                               single_time_tile=single_time_tile)

    smem_spec = pl.BlockSpec(memory_space=pltpu.MemorySpace.SMEM)

    res_flops = c_in if c_in > c_out else 1
    cost = pl.CostEstimate(
        flops=int(2 * B * t_out * N * c_out * (c_in * kt + res_flops)),
        transcendentals=0,
        bytes_accessed=int(4 * (x_nchw.size + B * c_out * t_out * N)),
    )

    return pl.pallas_call(
        kernel,
        out_shape=jax.ShapeDtypeStruct((B, c_out, t_out, N), x_nchw.dtype),
        grid=(n_b_tiles, n_t_tiles),
        in_specs=[
            smem_spec,  # conv weights (flat)
            smem_spec,  # conv bias
            smem_spec,  # modify weights (flat)
            smem_spec,  # modify bias
            # Full-T input block; constant block index along the time-tile axis,
            # so it stays resident in VMEM while the output tiles stream out.
            pl.BlockSpec((b_tile, c_in, T, N), lambda b, t: (b, 0, 0, 0)),
        ],
        out_specs=pl.BlockSpec((b_tile, c_out, t_tile, N), lambda b, t: (b, 0, t, 0)),
        compiler_params=pltpu.CompilerParams(
            dimension_semantics=("parallel", "parallel"),
            vmem_limit_bytes=32 * 1024 * 1024,
        ),
        cost_estimate=cost,
    )(cw_flat, conv_b, mw_flat, modify_b, x_nchw)


def reference_forward(x_nchw, conv_w, conv_b, modify_w, modify_b,
                      *, kt, dilation, c_in, c_out):
    B, _, T, N = x_nchw.shape
    if c_in > c_out:
        x_input = lax.conv_general_dilated(
            x_nchw, modify_w, window_strides=(1, 1), padding='VALID',
            dimension_numbers=('NCHW', 'OIHW', 'NCHW')) + modify_b[None, :, None, None]
    elif c_in < c_out:
        pad = jnp.zeros((B, c_out - c_in, T, N), dtype=x_nchw.dtype)
        x_input = jnp.concatenate([x_nchw, pad], axis=1)
    else:
        x_input = x_nchw
    x_input = x_input[:, :, dilation * (kt - 1):, :]
    conv = lax.conv_general_dilated(
        x_nchw, conv_w, window_strides=(1, 1), padding='VALID',
        rhs_dilation=(dilation, 1),
        dimension_numbers=('NCHW', 'OIHW', 'NCHW')) + conv_b[None, :, None, None]
    return jnp.maximum(conv + x_input, 0.0)


if __name__ == "__main__":
    # Small shapes consistent with the module: batch=2, c_in=c_out=4, time=16, routes=16.
    B, C_IN, C_OUT, T, N = 2, 4, 4, 16, 16
    KT, DIL = 3, 2

    key = jax.random.PRNGKey(0)
    kx, kw, kb, kmw, kmb = jax.random.split(key, 5)

    x = jax.random.normal(kx, (B, C_IN, T, N), dtype=jnp.float32)

    # Deterministic parameter init (PyTorch-Conv2d-style uniform bounds).
    bound_conv = 1.0 / (C_IN * KT) ** 0.5
    conv_w = jax.random.uniform(kw, (C_OUT, C_IN, KT, 1), jnp.float32, -bound_conv, bound_conv)
    conv_b = jax.random.uniform(kb, (C_OUT,), jnp.float32, -bound_conv, bound_conv)
    bound_mod = 1.0 / C_IN ** 0.5
    modify_w = jax.random.uniform(kmw, (C_OUT, C_IN, 1, 1), jnp.float32, -bound_mod, bound_mod)
    modify_b = jax.random.uniform(kmb, (C_OUT,), jnp.float32, -bound_mod, bound_mod)

    out = temporal_conv_layer(x, conv_w, conv_b, modify_w, modify_b,
                              kt=KT, dilation=DIL, c_in=C_IN, c_out=C_OUT)
    out = jax.block_until_ready(out)

    ref = reference_forward(x, conv_w, conv_b, modify_w, modify_b,
                            kt=KT, dilation=DIL, c_in=C_IN, c_out=C_OUT)
    ref = jax.block_until_ready(ref)

    assert out.shape == (B, C_OUT, T - DIL * (KT - 1), N), out.shape
    assert jnp.allclose(out, ref, atol=1e-5, rtol=1e-5), "mismatch vs reference"
    print("KERNEL_OK")
</pallas_src>

<mosaic_0001>
module attributes {stable_mosaic.version = 11 : i64} {
  func.func @_temporal_conv_kernel(%arg0: i32, %arg1: i32, %arg2: memref<48xf32, #tpu.memory_space<smem>>, %arg3: memref<4xf32, #tpu.memory_space<smem>>, %arg4: memref<16xf32, #tpu.memory_space<smem>>, %arg5: memref<4xf32, #tpu.memory_space<smem>>, %arg6: memref<2x4x16x16xf32, #tpu.memory_space<vmem>>, %arg7: memref<2x4x12x16xf32, #tpu.memory_space<vmem>>) attributes {dimension_semantics = [#tpu.dimension_semantics<parallel>, #tpu.dimension_semantics<parallel>], iteration_bounds = array<i64: 1, 1>, scalar_prefetch = 0 : i64, scratch_operands = 0 : i64, tpu.core_type = #tpu.core_type<tc>, window_params = [{transform_indices = @transform_0, window_bounds = array<i64: 48>}, {transform_indices = @transform_1, window_bounds = array<i64: 4>}, {transform_indices = @transform_2, window_bounds = array<i64: 16>}, {transform_indices = @transform_3, window_bounds = array<i64: 4>}, {transform_indices = @transform_4, window_bounds = array<i64: 2, 4, 16, 16>}, {transform_indices = @transform_5, window_bounds = array<i64: 2, 4, 12, 16>}]} {
    %c0 = arith.constant 0 : index
    %c0_0 = arith.constant 0 : index
    %c0_1 = arith.constant 0 : index
    %c0_2 = arith.constant 0 : index
    %0 = vector.load %arg6[%c0, %c0_0, %c0_1, %c0_2] : memref<2x4x16x16xf32, #tpu.memory_space<vmem>>, vector<2x1x12x16xf32>
    %1 = vector.shape_cast %0 : vector<2x1x12x16xf32> to vector<2x12x16xf32>
    %c0_3 = arith.constant 0 : index
    %c0_4 = arith.constant 0 : index
    %c2 = arith.constant 2 : index
    %c0_5 = arith.constant 0 : index
    %2 = vector.load %arg6[%c0_3, %c0_4, %c2, %c0_5] : memref<2x4x16x16xf32, #tpu.memory_space<vmem>>, vector<2x1x12x16xf32>
    %3 = vector.shape_cast %2 : vector<2x1x12x16xf32> to vector<2x12x16xf32>
    %c0_6 = arith.constant 0 : index
    %c0_7 = arith.constant 0 : index
    %c4 = arith.constant 4 : index
    %c0_8 = arith.constant 0 : index
    %4 = vector.load %arg6[%c0_6, %c0_7, %c4, %c0_8] : memref<2x4x16x16xf32, #tpu.memory_space<vmem>>, vector<2x1x12x16xf32>
    %5 = vector.shape_cast %4 : vector<2x1x12x16xf32> to vector<2x12x16xf32>
    %c0_9 = arith.constant 0 : index
    %c1 = arith.constant 1 : index
    %c0_10 = arith.constant 0 : index
    %c0_11 = arith.constant 0 : index
    %6 = vector.load %arg6[%c0_9, %c1, %c0_10, %c0_11] : memref<2x4x16x16xf32, #tpu.memory_space<vmem>>, vector<2x1x12x16xf32>
    %7 = vector.shape_cast %6 : vector<2x1x12x16xf32> to vector<2x12x16xf32>
    %c0_12 = arith.constant 0 : index
    %c1_13 = arith.constant 1 : index
    %c2_14 = arith.constant 2 : index
    %c0_15 = arith.constant 0 : index
    %8 = vector.load %arg6[%c0_12, %c1_13, %c2_14, %c0_15] : memref<2x4x16x16xf32, #tpu.memory_space<vmem>>, vector<2x1x12x16xf32>
    %9 = vector.shape_cast %8 : vector<2x1x12x16xf32> to vector<2x12x16xf32>
    %c0_16 = arith.constant 0 : index
    %c1_17 = arith.constant 1 : index
    %c4_18 = arith.constant 4 : index
    %c0_19 = arith.constant 0 : index
    %10 = vector.load %arg6[%c0_16, %c1_17, %c4_18, %c0_19] : memref<2x4x16x16xf32, #tpu.memory_space<vmem>>, vector<2x1x12x16xf32>
    %11 = vector.shape_cast %10 : vector<2x1x12x16xf32> to vector<2x12x16xf32>
    %c0_20 = arith.constant 0 : index
    %c2_21 = arith.constant 2 : index
    %c0_22 = arith.constant 0 : index
    %c0_23 = arith.constant 0 : index
    %12 = vector.load %arg6[%c0_20, %c2_21, %c0_22, %c0_23] : memref<2x4x16x16xf32, #tpu.memory_space<vmem>>, vector<2x1x12x16xf32>
    %13 = vector.shape_cast %12 : vector<2x1x12x16xf32> to vector<2x12x16xf32>
    %c0_24 = arith.constant 0 : index
    %c2_25 = arith.constant 2 : index
    %c2_26 = arith.constant 2 : index
    %c0_27 = arith.constant 0 : index
    %14 = vector.load %arg6[%c0_24, %c2_25, %c2_26, %c0_27] : memref<2x4x16x16xf32, #tpu.memory_space<vmem>>, vector<2x1x12x16xf32>
    %15 = vector.shape_cast %14 : vector<2x1x12x16xf32> to vector<2x12x16xf32>
    %c0_28 = arith.constant 0 : index
    %c2_29 = arith.constant 2 : index
    %c4_30 = arith.constant 4 : index
    %c0_31 = arith.constant 0 : index
    %16 = vector.load %arg6[%c0_28, %c2_29, %c4_30, %c0_31] : memref<2x4x16x16xf32, #tpu.memory_space<vmem>>, vector<2x1x12x16xf32>
    %17 = vector.shape_cast %16 : vector<2x1x12x16xf32> to vector<2x12x16xf32>
    %c0_32 = arith.constant 0 : index
    %c3 = arith.constant 3 : index
    %c0_33 = arith.constant 0 : index
    %c0_34 = arith.constant 0 : index
    %18 = vector.load %arg6[%c0_32, %c3, %c0_33, %c0_34] : memref<2x4x16x16xf32, #tpu.memory_space<vmem>>, vector<2x1x12x16xf32>
    %19 = vector.shape_cast %18 : vector<2x1x12x16xf32> to vector<2x12x16xf32>
    %c0_35 = arith.constant 0 : index
    %c3_36 = arith.constant 3 : index
    %c2_37 = arith.constant 2 : index
    %c0_38 = arith.constant 0 : index
    %20 = vector.load %arg6[%c0_35, %c3_36, %c2_37, %c0_38] : memref<2x4x16x16xf32, #tpu.memory_space<vmem>>, vector<2x1x12x16xf32>
    %21 = vector.shape_cast %20 : vector<2x1x12x16xf32> to vector<2x12x16xf32>
    %c0_39 = arith.constant 0 : index
    %c3_40 = arith.constant 3 : index
    %c4_41 = arith.constant 4 : index
    %c0_42 = arith.constant 0 : index
    %22 = vector.load %arg6[%c0_39, %c3_40, %c4_41, %c0_42] : memref<2x4x16x16xf32, #tpu.memory_space<vmem>>, vector<2x1x12x16xf32>
    %23 = vector.shape_cast %22 : vector<2x1x12x16xf32> to vector<2x12x16xf32>
    %c0_43 = arith.constant 0 : index
    %24 = memref.load %arg3[%c0_43] : memref<4xf32, #tpu.memory_space<smem>>
    %25 = vector.broadcast %24 : f32 to vector<2x12x16xf32>
    %c0_44 = arith.constant 0 : index
    %26 = memref.load %arg2[%c0_44] : memref<48xf32, #tpu.memory_space<smem>>
    %27 = vector.broadcast %26 : f32 to vector<2x12x16xf32>
    %28 = arith.mulf %1, %27 : vector<2x12x16xf32>
    %29 = arith.addf %25, %28 : vector<2x12x16xf32>
    %c1_45 = arith.constant 1 : index
    %30 = memref.load %arg2[%c1_45] : memref<48xf32, #tpu.memory_space<smem>>
    %31 = vector.broadcast %30 : f32 to vector<2x12x16xf32>
    %32 = arith.mulf %3, %31 : vector<2x12x16xf32>
    %33 = arith.addf %29, %32 : vector<2x12x16xf32>
    %c2_46 = arith.constant 2 : index
    %34 = memref.load %arg2[%c2_46] : memref<48xf32, #tpu.memory_space<smem>>
    %35 = vector.broadcast %34 : f32 to vector<2x12x16xf32>
    %36 = arith.mulf %5, %35 : vector<2x12x16xf32>
    %37 = arith.addf %33, %36 : vector<2x12x16xf32>
    %c3_47 = arith.constant 3 : index
    %38 = memref.load %arg2[%c3_47] : memref<48xf32, #tpu.memory_space<smem>>
    %39 = vector.broadcast %38 : f32 to vector<2x12x16xf32>
    %40 = arith.mulf %7, %39 : vector<2x12x16xf32>
    %41 = arith.addf %37, %40 : vector<2x12x16xf32>
    %c4_48 = arith.constant 4 : index
    %42 = memref.load %arg2[%c4_48] : memref<48xf32, #tpu.memory_space<smem>>
    %43 = vector.broadcast %42 : f32 to vector<2x12x16xf32>
    %44 = arith.mulf %9, %43 : vector<2x12x16xf32>
    %45 = arith.addf %41, %44 : vector<2x12x16xf32>
    %c5 = arith.constant 5 : index
    %46 = memref.load %arg2[%c5] : memref<48xf32, #tpu.memory_space<smem>>
    %47 = vector.broadcast %46 : f32 to vector<2x12x16xf32>
    %48 = arith.mulf %11, %47 : vector<2x12x16xf32>
    %49 = arith.addf %45, %48 : vector<2x12x16xf32>
    %c6 = arith.constant 6 : index
    %50 = memref.load %arg2[%c6] : memref<48xf32, #tpu.memory_space<smem>>
    %51 = vector.broadcast %50 : f32 to vector<2x12x16xf32>
    %52 = arith.mulf %13, %51 : vector<2x12x16xf32>
    %53 = arith.addf %49, %52 : vector<2x12x16xf32>
    %c7 = arith.constant 7 : index
    %54 = memref.load %arg2[%c7] : memref<48xf32, #tpu.memory_space<smem>>
    %55 = vector.broadcast %54 : f32 to vector<2x12x16xf32>
    %56 = arith.mulf %15, %55 : vector<2x12x16xf32>
    %57 = arith.addf %53, %56 : vector<2x12x16xf32>
    %c8 = arith.constant 8 : index
    %58 = memref.load %arg2[%c8] : memref<48xf32, #tpu.memory_space<smem>>
    %59 = vector.broadcast %58 : f32 to vector<2x12x16xf32>
    %60 = arith.mulf %17, %59 : vector<2x12x16xf32>
    %61 = arith.addf %57, %60 : vector<2x12x16xf32>
    %c9 = arith.constant 9 : index
    %62 = memref.load %arg2[%c9] : memref<48xf32, #tpu.memory_space<smem>>
    %63 = vector.broadcast %62 : f32 to vector<2x12x16xf32>
    %64 = arith.mulf %19, %63 : vector<2x12x16xf32>
    %65 = arith.addf %61, %64 : vector<2x12x16xf32>
    %c10 = arith.constant 10 : index
    %66 = memref.load %arg2[%c10] : memref<48xf32, #tpu.memory_space<smem>>
    %67 = vector.broadcast %66 : f32 to vector<2x12x16xf32>
    %68 = arith.mulf %21, %67 : vector<2x12x16xf32>
    %69 = arith.addf %65, %68 : vector<2x12x16xf32>
    %c11 = arith.constant 11 : index
    %70 = memref.load %arg2[%c11] : memref<48xf32, #tpu.memory_space<smem>>
    %71 = vector.broadcast %70 : f32 to vector<2x12x16xf32>
    %72 = arith.mulf %23, %71 : vector<2x12x16xf32>
    %73 = arith.addf %69, %72 : vector<2x12x16xf32>
    %74 = arith.addf %73, %5 : vector<2x12x16xf32>
    %cst = arith.constant 0.000000e+00 : f32
    %75 = vector.broadcast %cst : f32 to vector<2x12x16xf32>
    %76 = arith.maximumf %74, %75 : vector<2x12x16xf32>
    %c0_49 = arith.constant 0 : index
    %c0_50 = arith.constant 0 : index
    %c0_51 = arith.constant 0 : index
    %c0_52 = arith.constant 0 : index
    %77 = vector.load %arg7[%c0_49, %c0_50, %c0_51, %c0_52] : memref<2x4x12x16xf32, #tpu.memory_space<vmem>>, vector<2x1x12x16xf32>
    %78 = vector.shape_cast %77 : vector<2x1x12x16xf32> to vector<2x12x16xf32>
    %79 = vector.shape_cast %76 : vector<2x12x16xf32> to vector<2x1x12x16xf32>
    tpu.vector_store %arg7[%c0_49, %c0_50, %c0_51, %c0_52], %79 {strides = array<i32>} : memref<2x4x12x16xf32, #tpu.memory_space<vmem>>, vector<2x1x12x16xf32>,
    %c1_53 = arith.constant 1 : index
    %80 = memref.load %arg3[%c1_53] : memref<4xf32, #tpu.memory_space<smem>>
    %81 = vector.broadcast %80 : f32 to vector<2x12x16xf32>
    %c12 = arith.constant 12 : index
    %82 = memref.load %arg2[%c12] : memref<48xf32, #tpu.memory_space<smem>>
    %83 = vector.broadcast %82 : f32 to vector<2x12x16xf32>
    %84 = arith.mulf %1, %83 : vector<2x12x16xf32>
    %85 = arith.addf %81, %84 : vector<2x12x16xf32>
    %c13 = arith.constant 13 : index
    %86 = memref.load %arg2[%c13] : memref<48xf32, #tpu.memory_space<smem>>
    %87 = vector.broadcast %86 : f32 to vector<2x12x16xf32>
    %88 = arith.mulf %3, %87 : vector<2x12x16xf32>
    %89 = arith.addf %85, %88 : vector<2x12x16xf32>
    %c14 = arith.constant 14 : index
    %90 = memref.load %arg2[%c14] : memref<48xf32, #tpu.memory_space<smem>>
    %91 = vector.broadcast %90 : f32 to vector<2x12x16xf32>
    %92 = arith.mulf %5, %91 : vector<2x12x16xf32>
    %93 = arith.addf %89, %92 : vector<2x12x16xf32>
    %c15 = arith.constant 15 : index
    %94 = memref.load %arg2[%c15] : memref<48xf32, #tpu.memory_space<smem>>
    %95 = vector.broadcast %94 : f32 to vector<2x12x16xf32>
    %96 = arith.mulf %7, %95 : vector<2x12x16xf32>
    %97 = arith.addf %93, %96 : vector<2x12x16xf32>
    %c16 = arith.constant 16 : index
    %98 = memref.load %arg2[%c16] : memref<48xf32, #tpu.memory_space<smem>>
    %99 = vector.broadcast %98 : f32 to vector<2x12x16xf32>
    %100 = arith.mulf %9, %99 : vector<2x12x16xf32>
    %101 = arith.addf %97, %100 : vector<2x12x16xf32>
    %c17 = arith.constant 17 : index
    %102 = memref.load %arg2[%c17] : memref<48xf32, #tpu.memory_space<smem>>
    %103 = vector.broadcast %102 : f32 to vector<2x12x16xf32>
    %104 = arith.mulf %11, %103 : vector<2x12x16xf32>
    %105 = arith.addf %101, %104 : vector<2x12x16xf32>
    %c18 = arith.constant 18 : index
    %106 = memref.load %arg2[%c18] : memref<48xf32, #tpu.memory_space<smem>>
    %107 = vector.broadcast %106 : f32 to vector<2x12x16xf32>
    %108 = arith.mulf %13, %107 : vector<2x12x16xf32>
    %109 = arith.addf %105, %108 : vector<2x12x16xf32>
    %c19 = arith.constant 19 : index
    %110 = memref.load %arg2[%c19] : memref<48xf32, #tpu.memory_space<smem>>
    %111 = vector.broadcast %110 : f32 to vector<2x12x16xf32>
    %112 = arith.mulf %15, %111 : vector<2x12x16xf32>
    %113 = arith.addf %109, %112 : vector<2x12x16xf32>
    %c20 = arith.constant 20 : index
    %114 = memref.load %arg2[%c20] : memref<48xf32, #tpu.memory_space<smem>>
    %115 = vector.broadcast %114 : f32 to vector<2x12x16xf32>
    %116 = arith.mulf %17, %115 : vector<2x12x16xf32>
    %117 = arith.addf %113, %116 : vector<2x12x16xf32>
    %c21 = arith.constant 21 : index
    %118 = memref.load %arg2[%c21] : memref<48xf32, #tpu.memory_space<smem>>
    %119 = vector.broadcast %118 : f32 to vector<2x12x16xf32>
    %120 = arith.mulf %19, %119 : vector<2x12x16xf32>
    %121 = arith.addf %117, %120 : vector<2x12x16xf32>
    %c22 = arith.constant 22 : index
    %122 = memref.load %arg2[%c22] : memref<48xf32, #tpu.memory_space<smem>>
    %123 = vector.broadcast %122 : f32 to vector<2x12x16xf32>
    %124 = arith.mulf %21, %123 : vector<2x12x16xf32>
    %125 = arith.addf %121, %124 : vector<2x12x16xf32>
    %c23 = arith.constant 23 : index
    %126 = memref.load %arg2[%c23] : memref<48xf32, #tpu.memory_space<smem>>
    %127 = vector.broadcast %126 : f32 to vector<2x12x16xf32>
    %128 = arith.mulf %23, %127 : vector<2x12x16xf32>
    %129 = arith.addf %125, %128 : vector<2x12x16xf32>
    %130 = arith.addf %129, %11 : vector<2x12x16xf32>
    %cst_54 = arith.constant 0.000000e+00 : f32
    %131 = vector.broadcast %cst_54 : f32 to vector<2x12x16xf32>
    %132 = arith.maximumf %130, %131 : vector<2x12x16xf32>
    %c0_55 = arith.constant 0 : index
    %c1_56 = arith.constant 1 : index
    %c0_57 = arith.constant 0 : index
    %c0_58 = arith.constant 0 : index
    %133 = vector.load %arg7[%c0_55, %c1_56, %c0_57, %c0_58] : memref<2x4x12x16xf32, #tpu.memory_space<vmem>>, vector<2x1x12x16xf32>
    %134 = vector.shape_cast %133 : vector<2x1x12x16xf32> to vector<2x12x16xf32>
    %135 = vector.shape_cast %132 : vector<2x12x16xf32> to vector<2x1x12x16xf32>
    tpu.vector_store %arg7[%c0_55, %c1_56, %c0_57, %c0_58], %135 {strides = array<i32>} : memref<2x4x12x16xf32, #tpu.memory_space<vmem>>, vector<2x1x12x16xf32>,
    %c2_59 = arith.constant 2 : index
    %136 = memref.load %arg3[%c2_59] : memref<4xf32, #tpu.memory_space<smem>>
    %137 = vector.broadcast %136 : f32 to vector<2x12x16xf32>
    %c24 = arith.constant 24 : index
    %138 = memref.load %arg2[%c24] : memref<48xf32, #tpu.memory_space<smem>>
    %139 = vector.broadcast %138 : f32 to vector<2x12x16xf32>
    %140 = arith.mulf %1, %139 : vector<2x12x16xf32>
    %141 = arith.addf %137, %140 : vector<2x12x16xf32>
    %c25 = arith.constant 25 : index
    %142 = memref.load %arg2[%c25] : memref<48xf32, #tpu.memory_space<smem>>
    %143 = vector.broadcast %142 : f32 to vector<2x12x16xf32>
    %144 = arith.mulf %3, %143 : vector<2x12x16xf32>
    %145 = arith.addf %141, %144 : vector<2x12x16xf32>
    %c26 = arith.constant 26 : index
    %146 = memref.load %arg2[%c26] : memref<48xf32, #tpu.memory_space<smem>>
    %147 = vector.broadcast %146 : f32 to vector<2x12x16xf32>
    %148 = arith.mulf %5, %147 : vector<2x12x16xf32>
    %149 = arith.addf %145, %148 : vector<2x12x16xf32>
    %c27 = arith.constant 27 : index
    %150 = memref.load %arg2[%c27] : memref<48xf32, #tpu.memory_space<smem>>
    %151 = vector.broadcast %150 : f32 to vector<2x12x16xf32>
    %152 = arith.mulf %7, %151 : vector<2x12x16xf32>
    %153 = arith.addf %149, %152 : vector<2x12x16xf32>
    %c28 = arith.constant 28 : index
    %154 = memref.load %arg2[%c28] : memref<48xf32, #tpu.memory_space<smem>>
    %155 = vector.broadcast %154 : f32 to vector<2x12x16xf32>
    %156 = arith.mulf %9, %155 : vector<2x12x16xf32>
    %157 = arith.addf %153, %156 : vector<2x12x16xf32>
    %c29 = arith.constant 29 : index
    %158 = memref.load %arg2[%c29] : memref<48xf32, #tpu.memory_space<smem>>
    %159 = vector.broadcast %158 : f32 to vector<2x12x16xf32>
    %160 = arith.mulf %11, %159 : vector<2x12x16xf32>
    %161 = arith.addf %157, %160 : vector<2x12x16xf32>
    %c30 = arith.constant 30 : index
    %162 = memref.load %arg2[%c30] : memref<48xf32, #tpu.memory_space<smem>>
    %163 = vector.broadcast %162 : f32 to vector<2x12x16xf32>
    %164 = arith.mulf %13, %163 : vector<2x12x16xf32>
    %165 = arith.addf %161, %164 : vector<2x12x16xf32>
    %c31 = arith.constant 31 : index
    %166 = memref.load %arg2[%c31] : memref<48xf32, #tpu.memory_space<smem>>
    %167 = vector.broadcast %166 : f32 to vector<2x12x16xf32>
    %168 = arith.mulf %15, %167 : vector<2x12x16xf32>
    %169 = arith.addf %165, %168 : vector<2x12x16xf32>
    %c32 = arith.constant 32 : index
    %170 = memref.load %arg2[%c32] : memref<48xf32, #tpu.memory_space<smem>>
    %171 = vector.broadcast %170 : f32 to vector<2x12x16xf32>
    %172 = arith.mulf %17, %171 : vector<2x12x16xf32>
    %173 = arith.addf %169, %172 : vector<2x12x16xf32>
    %c33 = arith.constant 33 : index
    %174 = memref.load %arg2[%c33] : memref<48xf32, #tpu.memory_space<smem>>
    %175 = vector.broadcast %174 : f32 to vector<2x12x16xf32>
    %176 = arith.mulf %19, %175 : vector<2x12x16xf32>
    %177 = arith.addf %173, %176 : vector<2x12x16xf32>
    %c34 = arith.constant 34 : index
    %178 = memref.load %arg2[%c34] : memref<48xf32, #tpu.memory_space<smem>>
    %179 = vector.broadcast %178 : f32 to vector<2x12x16xf32>
    %180 = arith.mulf %21, %179 : vector<2x12x16xf32>
    %181 = arith.addf %177, %180 : vector<2x12x16xf32>
    %c35 = arith.constant 35 : index
    %182 = memref.load %arg2[%c35] : memref<48xf32, #tpu.memory_space<smem>>
    %183 = vector.broadcast %182 : f32 to vector<2x12x16xf32>
    %184 = arith.mulf %23, %183 : vector<2x12x16xf32>
    %185 = arith.addf %181, %184 : vector<2x12x16xf32>
    %186 = arith.addf %185, %17 : vector<2x12x16xf32>
    %cst_60 = arith.constant 0.000000e+00 : f32
    %187 = vector.broadcast %cst_60 : f32 to vector<2x12x16xf32>
    %188 = arith.maximumf %186, %187 : vector<2x12x16xf32>
    %c0_61 = arith.constant 0 : index
    %c2_62 = arith.constant 2 : index
    %c0_63 = arith.constant 0 : index
    %c0_64 = arith.constant 0 : index
    %189 = vector.load %arg7[%c0_61, %c2_62, %c0_63, %c0_64] : memref<2x4x12x16xf32, #tpu.memory_space<vmem>>, vector<2x1x12x16xf32>
    %190 = vector.shape_cast %189 : vector<2x1x12x16xf32> to vector<2x12x16xf32>
    %191 = vector.shape_cast %188 : vector<2x12x16xf32> to vector<2x1x12x16xf32>
    tpu.vector_store %arg7[%c0_61, %c2_62, %c0_63, %c0_64], %191 {strides = array<i32>} : memref<2x4x12x16xf32, #tpu.memory_space<vmem>>, vector<2x1x12x16xf32>,
    %c3_65 = arith.constant 3 : index
    %192 = memref.load %arg3[%c3_65] : memref<4xf32, #tpu.memory_space<smem>>
    %193 = vector.broadcast %192 : f32 to vector<2x12x16xf32>
    %c36 = arith.constant 36 : index
    %194 = memref.load %arg2[%c36] : memref<48xf32, #tpu.memory_space<smem>>
    %195 = vector.broadcast %194 : f32 to vector<2x12x16xf32>
    %196 = arith.mulf %1, %195 : vector<2x12x16xf32>
    %197 = arith.addf %193, %196 : vector<2x12x16xf32>
    %c37 = arith.constant 37 : index
    %198 = memref.load %arg2[%c37] : memref<48xf32, #tpu.memory_space<smem>>
    %199 = vector.broadcast %198 : f32 to vector<2x12x16xf32>
    %200 = arith.mulf %3, %199 : vector<2x12x16xf32>
    %201 = arith.addf %197, %200 : vector<2x12x16xf32>
    %c38 = arith.constant 38 : index
    %202 = memref.load %arg2[%c38] : memref<48xf32, #tpu.memory_space<smem>>
    %203 = vector.broadcast %202 : f32 to vector<2x12x16xf32>
    %204 = arith.mulf %5, %203 : vector<2x12x16xf32>
    %205 = arith.addf %201, %204 : vector<2x12x16xf32>
    %c39 = arith.constant 39 : index
    %206 = memref.load %arg2[%c39] : memref<48xf32, #tpu.memory_space<smem>>
    %207 = vector.broadcast %206 : f32 to vector<2x12x16xf32>
    %208 = arith.mulf %7, %207 : vector<2x12x16xf32>
    %209 = arith.addf %205, %208 : vector<2x12x16xf32>
    %c40 = arith.constant 40 : index
    %210 = memref.load %arg2[%c40] : memref<48xf32, #tpu.memory_space<smem>>
    %211 = vector.broadcast %210 : f32 to vector<2x12x16xf32>
    %212 = arith.mulf %9, %211 : vector<2x12x16xf32>
    %213 = arith.addf %209, %212 : vector<2x12x16xf32>
    %c41 = arith.constant 41 : index
    %214 = memref.load %arg2[%c41] : memref<48xf32, #tpu.memory_space<smem>>
    %215 = vector.broadcast %214 : f32 to vector<2x12x16xf32>
    %216 = arith.mulf %11, %215 : vector<2x12x16xf32>
    %217 = arith.addf %213, %216 : vector<2x12x16xf32>
    %c42 = arith.constant 42 : index
    %218 = memref.load %arg2[%c42] : memref<48xf32, #tpu.memory_space<smem>>
    %219 = vector.broadcast %218 : f32 to vector<2x12x16xf32>
    %220 = arith.mulf %13, %219 : vector<2x12x16xf32>
    %221 = arith.addf %217, %220 : vector<2x12x16xf32>
    %c43 = arith.constant 43 : index
    %222 = memref.load %arg2[%c43] : memref<48xf32, #tpu.memory_space<smem>>
    %223 = vector.broadcast %222 : f32 to vector<2x12x16xf32>
    %224 = arith.mulf %15, %223 : vector<2x12x16xf32>
    %225 = arith.addf %221, %224 : vector<2x12x16xf32>
    %c44 = arith.constant 44 : index
    %226 = memref.load %arg2[%c44] : memref<48xf32, #tpu.memory_space<smem>>
    %227 = vector.broadcast %226 : f32 to vector<2x12x16xf32>
    %228 = arith.mulf %17, %227 : vector<2x12x16xf32>
    %229 = arith.addf %225, %228 : vector<2x12x16xf32>
    %c45 = arith.constant 45 : index
    %230 = memref.load %arg2[%c45] : memref<48xf32, #tpu.memory_space<smem>>
    %231 = vector.broadcast %230 : f32 to vector<2x12x16xf32>
    %232 = arith.mulf %19, %231 : vector<2x12x16xf32>
    %233 = arith.addf %229, %232 : vector<2x12x16xf32>
    %c46 = arith.constant 46 : index
    %234 = memref.load %arg2[%c46] : memref<48xf32, #tpu.memory_space<smem>>
    %235 = vector.broadcast %234 : f32 to vector<2x12x16xf32>
    %236 = arith.mulf %21, %235 : vector<2x12x16xf32>
    %237 = arith.addf %233, %236 : vector<2x12x16xf32>
    %c47 = arith.constant 47 : index
    %238 = memref.load %arg2[%c47] : memref<48xf32, #tpu.memory_space<smem>>
    %239 = vector.broadcast %238 : f32 to vector<2x12x16xf32>
    %240 = arith.mulf %23, %239 : vector<2x12x16xf32>
    %241 = arith.addf %237, %240 : vector<2x12x16xf32>
    %242 = arith.addf %241, %23 : vector<2x12x16xf32>
    %cst_66 = arith.constant 0.000000e+00 : f32
    %243 = vector.broadcast %cst_66 : f32 to vector<2x12x16xf32>
    %244 = arith.maximumf %242, %243 : vector<2x12x16xf32>
    %c0_67 = arith.constant 0 : index
    %c3_68 = arith.constant 3 : index
    %c0_69 = arith.constant 0 : index
    %c0_70 = arith.constant 0 : index
    %245 = vector.load %arg7[%c0_67, %c3_68, %c0_69, %c0_70] : memref<2x4x12x16xf32, #tpu.memory_space<vmem>>, vector<2x1x12x16xf32>
    %246 = vector.shape_cast %245 : vector<2x1x12x16xf32> to vector<2x12x16xf32>
    %247 = vector.shape_cast %244 : vector<2x12x16xf32> to vector<2x1x12x16xf32>
    tpu.vector_store %arg7[%c0_67, %c3_68, %c0_69, %c0_70], %247 {strides = array<i32>} : memref<2x4x12x16xf32, #tpu.memory_space<vmem>>, vector<2x1x12x16xf32>,
    return
  }
  func.func @transform_0(%arg0: i32, %arg1: i32) -> i32 {
    %c0_i32 = arith.constant 0 : i32
    %c0_i32_0 = arith.constant 0 : i32
    return %c0_i32 : i32
  }
  func.func @transform_1(%arg0: i32, %arg1: i32) -> i32 {
    %c0_i32 = arith.constant 0 : i32
    %c0_i32_0 = arith.constant 0 : i32
    return %c0_i32 : i32
  }
  func.func @transform_2(%arg0: i32, %arg1: i32) -> i32 {
    %c0_i32 = arith.constant 0 : i32
    %c0_i32_0 = arith.constant 0 : i32
    return %c0_i32 : i32
  }
  func.func @transform_3(%arg0: i32, %arg1: i32) -> i32 {
    %c0_i32 = arith.constant 0 : i32
    %c0_i32_0 = arith.constant 0 : i32
    return %c0_i32 : i32
  }
  func.func @transform_4(%arg0: i32, %arg1: i32) -> (i32, i32, i32, i32) {
    %c0_i32 = arith.constant 0 : i32
    %c0_i32_0 = arith.constant 0 : i32
    %c0_i32_1 = arith.constant 0 : i32
    %c0_i32_2 = arith.constant 0 : i32
    return %arg0, %c0_i32, %c0_i32_0, %c0_i32_1 : i32, i32, i32, i32
  }
  func.func @transform_5(%arg0: i32, %arg1: i32) -> (i32, i32, i32, i32) {
    %c0_i32 = arith.constant 0 : i32
    %c0_i32_0 = arith.constant 0 : i32
    %c0_i32_1 = arith.constant 0 : i32
    return %arg0, %c0_i32, %arg1, %c0_i32_0 : i32, i32, i32, i32
  }
}

</mosaic_0001>

<bundles_post_ra>
// kernel: tpu_custom_call.1
= control target key start
LH: loop header
LB: loop body
LE: loop exit
PB: predicated region body
PF: predicated region fallthrough
CT: control target
= control target key end

     0   :  { %10 = vsyncpa [#allocation4], 0  ;;  %s1710_s0 = inlined_call_operand.hbm [shape: f32[48], index: 0, kind: input, shape index: {}]   ;;  %s1711_s1 = inlined_call_operand.hbm [shape: f32[4], index: 1, kind: input, shape index: {}]   ;;  %s1712_s2 = inlined_call_operand.vmem [shape: f32[16], index: 2, kind: input, shape index: {}]   ;;  %s1713_s3 = inlined_call_operand.vmem [shape: f32[4], index: 3, kind: input, shape index: {}]   ;;  %s1714_s4 = inlined_call_operand.hbm [shape: f32[2,4,16,16], index: 4, kind: input, shape index: {}]   ;;  %s1715_s5 = inlined_call_operand.vmem [shape: f32[2,4,12,16], index: 5, kind: output, shape index: {}]  }
   0x1   :  { %11 = vsyncpa [#allocation7], 0 }
   0x2   :  { %12 = vsyncpa [#allocation5], 0 }
   0x3   :  { %13 = vsyncpa [#allocation10], 0  ;;  %s20_s20 = sshll.u32 %s1710_s0, 4  ;;  %s21_s20 = int_to_ptr.hbm [resolvable:$true] %s20_s20 }
   0x4   :  { %14 = vsyncpa [#allocation3], 0  ;;  %s29_s23 = sshll.u32 %s1711_s1, 4  ;;  %s837_s24 = smov [#allocation2]   ;;  %s30_s23 = int_to_ptr.hbm [resolvable:$true] %s29_s23 }
   0x5   :  { %23 = dma.hbm_to_smem %s21_s20, 16, %s837_s24, [#allocation4]  }
   0x6   :  { %s838_s25 = smov [#allocation6]   ;;  %s38_s28 = sshll.u32 %s1712_s2, 4  ;;  %s39_s28 = int_to_ptr.vmem [resolvable:$true] %s38_s28 }
   0x7   :  { %32 = dma.hbm_to_smem %s30_s23, 16, %s838_s25, [#allocation7]  }
   0x8   :  { %s47_s0 = sshll.u32 %s1713_s3, 4  ;;  %s839_s6 = smov [#allocation8]   ;;  %s48_s0 = int_to_ptr.vmem [resolvable:$true] %s47_s0 }
   0x9   :  { %41 = dma.vmem_to_smem %s39_s28, 16, %s839_s6, [#allocation5]  }
   0xa   :  { %s840_s7 = smov [#allocation9]   ;;  %s55_s9 = sshll.u32 %s1714_s4, 4  ;;  %s56_s9 = int_to_ptr.hbm [resolvable:$true] %s55_s9 }
   0xb   :  { %50 = dma.vmem_to_smem %s48_s0, 16, %s840_s7, [#allocation10]  }
   0xc   :  { %s841_s10 = smov [#allocation11]   ;;  %s842_s12 = smov 128  }
   0xd   :  { %s57_s11 = sshll.u32 %s841_s10, 4  ;;  %s843_s2 = smov 8   ;;  %s58_s11 = int_to_ptr.vmem [resolvable:$true] %s57_s11 }
   0xe   :  { %63 = dma.hbm_to_vmem [thread:$0]  %s56_s9, 2048, %s58_s11, [#allocation3], %s842_s12, %s842_s12, %s843_s2  }
   0xf   :  { %827 = dma.done.wait [#allocation4], 16  }
  0x10   :  { %828 = vsyncadd [#allocation4], 4294967280 }
  0x11   :  { %829 = dma.done.wait [#allocation7], 16  }
  0x12   :  { %830 = vsyncadd [#allocation7], 4294967280 }
  0x13   :  { %831 = dma.done.wait [#allocation5], 16  }
  0x14   :  { %832 = vsyncadd [#allocation5], 4294967280 }
  0x15   :  { %833 = dma.done.wait [#allocation10], 16  }
  0x16   :  { %834 = vsyncadd [#allocation10], 4294967280 }
  0x17   :  { %835 = dma.done.wait [#allocation3], 2048  }
  0x18   :  { %836 = vsyncadd [#allocation3], 4294965248 }
  0x19   :  { %84 = sfence }
  0x1a   :  { %s136_s3 = sld [smem:[#allocation6]]  ;;  %v889_v0 = vld [vmem:[#allocation11] sm:$0xff]  ;;  %v891_v1 = vld [vmem:[#allocation11 + $0x8] sm:$0xf]  ;;  %v905_v7 = vld [vmem:[#allocation11 + $0x10] sm:$0xff]  ;;  %vm266_vm0 = vcmask 130048  }
  0x1b   :  { %s138_s4 = sld [smem:[#allocation2]]  ;;  %v893_v2 = vld [vmem:[#allocation11 + $0x2] sm:$0xff]  ;;  %v895_v3 = vld [vmem:[#allocation11 + $0xa] sm:$0xf]  ;;  %v923_v14 = vld [vmem:[#allocation11 + $0x18] sm:$0xf] }
  0x1c   :  { %s686_s13 = sld [smem:[#allocation2 + $0x1]]  ;;  %v897_v4 = vld [vmem:[#allocation11 + $0x4] sm:$0xff]  ;;  %v913_v10 = vld [vmem:[#allocation11 + $0xc] sm:$0xf]  ;;  %v927_v16 = vld [vmem:[#allocation11 + $0x12] sm:$0xff]  ;;  %vm268_vm1 = vcmask 125952  }
  0x1d   :  { %s687_s14 = sld [smem:[#allocation2 + $0x2]]  ;;  %v943_v23 = vld [vmem:[#allocation11 + $0x1a] sm:$0xf]  ;;  %v957_v31 = vld [vmem:[#allocation11 + $0x40] sm:$0xff]  ;;  %v975_v38 = vld [vmem:[#allocation11 + $0x28] sm:$0xf] }
  0x1e   :  { %s688_s15 = sld [smem:[#allocation2 + $0x3]]  ;;  %1758 = vst [vmem:[#allocation17_spill] sm:$0xff] %v943_v23  ;;  %v947_v25 = vld [vmem:[#allocation11 + $0x14] sm:$0xff]  ;;  %v953_v28 = vld [vmem:[#allocation11 + $0x1c] sm:$0xf]  ;;  %v959_v32 = vld [vmem:[#allocation11 + $0x20] sm:$0xff] }
  0x1f   :  { %s689_s16 = sld [smem:[#allocation2 + $0x4]]  ;;  %1759 = vst [vmem:[#allocation18_spill] sm:$0xff] %v953_v28  ;;  %v961_v33 = vld [vmem:[#allocation11 + $0x22] sm:$0xff]  ;;  %v977_v39 = vld [vmem:[#allocation11 + $0x2a] sm:$0xf]  ;;  %v983_v43 = vld [vmem:[#allocation11 + $0x30] sm:$0xff] }
  0x20   :  { %s690_s17 = sld [smem:[#allocation2 + $0x5]]  ;;  %v899_v5 = vstv %s136_s3  ;;  %1760 = vst [vmem:[#allocation19_spill] sm:$0xff] %v959_v32  ;;  %v981_v42 = vld [vmem:[#allocation11 + $0x24] sm:$0xff]  ;;  %v985_v44 = vld [vmem:[#allocation11 + $0x32] sm:$0xff]  ;;  %v1005_v52 = vld [vmem:[#allocation11 + $0x2c] sm:$0xf] }
  0x21   :  { %v901_v6 = vstv %s138_s4  ;;  %s903_s18 = sld [smem:[#allocation2 + $0x6]]  ;;  %1761 = vst [vmem:[#allocation20_spill] sm:$0xff] %v961_v33  ;;  %v1007_v53 = vld [vmem:[#allocation11 + $0x38] sm:$0xf] }
  0x22   :  { %v140_v8 = vmul.f32 %v901_v6, %v889_v0  ;;  %v909_v9 = vstv %s686_s13  ;;  %s911_s19 = sld [smem:[#allocation2 + $0x7]]  ;;  %v141_v11 = vmul.f32 %v901_v6, %v891_v1  ;;  %1762 = vst [vmem:[#allocation21_spill] sm:$0xff] %v975_v38  ;;  %v142_v48 = vmul.f32 %v901_v6, %v957_v31  ;;  %v1020_v59 = vld [vmem:[#allocation11 + $0x34] sm:$0xff] }
  0x23   :  { %v150_v12 = vmul.f32 %v909_v9, %v893_v2  ;;  %v919_v13 = vstv %s687_s14  ;;  %s921_s20 = sld [smem:[#allocation2 + $0x8]]  ;;  %v151_v15 = vmul.f32 %v909_v9, %v895_v3  ;;  %1763 = vst [vmem:[#allocation22_spill] sm:$0xff] %v977_v39 }
  0x24   :  { %v144_v17 = vadd.f32 %v140_v8, %v899_v5  ;;  %v160_v18 = vmul.f32 %v919_v13, %v897_v4  ;;  %v932_v19 = vstv %s688_s15  ;;  %s934_s21 = sld [smem:[#allocation2 + $0x9]]  ;;  %v145_v20 = vadd.f32 %v141_v11, %v899_v5  ;;  %1764 = vst [vmem:[#allocation23_spill] sm:$0xff] %v981_v42 }
  0x25   :  { %v170_v21 = vmul.f32 %v932_v19, %v905_v7  ;;  %v939_v22 = vstv %s689_s16  ;;  %s941_s22 = sld [smem:[#allocation2 + $0xa]]  ;;  %v161_v24 = vmul.f32 %v919_v13, %v913_v10  ;;  %v171_v30 = vmul.f32 %v932_v19, %v923_v14  ;;  %1765 = vst [vmem:[#allocation24_spill] sm:$0xff] %v983_v43 }
  0x26   :  { %v154_v26 = vadd.f32 %v150_v12, %v144_v17  ;;  %v949_v27 = vstv %s690_s17  ;;  %s951_s23 = sld [smem:[#allocation2 + $0xb]]  ;;  %v155_v29 = vadd.f32 %v151_v15, %v145_v20  ;;  %v180_v34 = vmul.f32 %v939_v22, %v927_v16  ;;  %1766 = vst [vmem:[#allocation25_spill] sm:$0xff] %v985_v44  ;;  %v1035_v12 = vld [vmem:[#allocation11 + $0x3a] sm:$0xf] }
  0x27   :  { %v966_v35 = vstv %s903_s18  ;;  %s968_s24 = sld [smem:[#allocation6 + $0x1]]  ;;  %v181_v41 = vmul.f32 %v939_v22, %v943_v23  ;;  %v190_v45 = vmul.f32 %v949_v27, %v947_v25  ;;  %v191_v47 = vmul.f32 %v949_v27, %v953_v28  ;;  %1767 = vst [vmem:[#allocation26_spill] sm:$0xff] %v1005_v52 }
  0x28   :  { %v164_v36 = vadd.f32 %v160_v18, %v154_v26  ;;  %v971_v37 = vstv %s911_s19  ;;  %s973_s25 = sld [smem:[#allocation2 + $0xc]]  ;;  %v165_v40 = vadd.f32 %v161_v24, %v155_v29  ;;  %v200_v50 = vmul.f32 %v966_v35, %v959_v32  ;;  %1768 = vst [vmem:[#allocation27_spill] sm:$0xff] %v1007_v53  ;;  %v1047_v24 = vld [vmem:[#allocation11 + $0x3c] sm:$0xf] }
  0x29   :  { %v990_v46 = vstv %s921_s20  ;;  %s992_s26 = sld [smem:[#allocation2 + $0xd]]  ;;  %v210_v55 = vmul.f32 %v971_v37, %v961_v33  ;;  %v201_v57 = vmul.f32 %v966_v35, %v975_v38  ;;  %v211_v58 = vmul.f32 %v971_v37, %v977_v39  ;;  %1769 = vst [vmem:[#allocation28_spill] sm:$0xff] %v1020_v59 }
  0x2a   :  { %v174_v49 = vadd.f32 %v170_v21, %v164_v36  ;;  %v1001_v51 = vstv %s934_s21  ;;  %s1003_s27 = sld [smem:[#allocation2 + $0xe]]  ;;  %v175_v54 = vadd.f32 %v171_v30, %v165_v40  ;;  %v220_v61 = vmul.f32 %v990_v46, %v981_v42  ;;  %1770 = vst [vmem:[#allocation29_spill] sm:$0xff] %v1035_v12 }
  0x2b   :  { %v1012_v56 = vstv %s941_s22  ;;  %s1014_s28 = sld [smem:[#allocation2 + $0xf]]  ;;  %v230_v8 = vmul.f32 %v1001_v51, %v983_v43  ;;  %v221_v15 = vmul.f32 %v990_v46, %v1005_v52  ;;  %v231_v17 = vmul.f32 %v1001_v51, %v1007_v53  ;;  %1771 = vst [vmem:[#allocation30_spill] sm:$0xff] %v1047_v24 }
  0x2c   :  { %v184_v60 = vadd.f32 %v180_v34, %v174_v49  ;;  %v1025_v62 = vstv %s951_s23  ;;  %s1027_s29 = sld [smem:[#allocation6 + $0x2]]  ;;  %v185_v63 = vadd.f32 %v181_v41, %v175_v54  ;;  %v240_v11 = vmul.f32 %v1012_v56, %v985_v44 }
  0x2d   :  { %s1033_s30 = sld [smem:[#allocation2 + $0x18]]  ;;  %v1042_v20 = vstv %s968_s24  ;;  %v250_v29 = vmul.f32 %v1025_v62, %v1020_v59 }
  0x2e   :  { %v194_v18 = vadd.f32 %v190_v45, %v184_v60  ;;  %v1045_v21 = vstv %s973_s25  ;;  %s716_s0 = sld [smem:[#allocation2 + $0x19]]  ;;  %v195_v26 = vadd.f32 %v191_v47, %v185_v63  ;;  %v241_v47 = vmul.f32 %v1012_v56, %v1035_v12 }
  0x2f   :  { %v276_v30 = vmul.f32 %v1045_v21, %v889_v0  ;;  %v1054_v34 = vstv %s992_s26  ;;  %s1056_s6 = sld [smem:[#allocation2 + $0x1a]]  ;;  %v277_v36 = vmul.f32 %v1045_v21, %v891_v1  ;;  %v251_v60 = vmul.f32 %v1025_v62, %v1047_v24 }
  0x30   :  { %v204_v40 = vadd.f32 %v200_v50, %v194_v18  ;;  %v1061_v41 = vstv %s1003_s27  ;;  %s1063_s7 = sld [smem:[#allocation2 + $0x1b]]  ;;  %v205_v45 = vadd.f32 %v201_v57, %v195_v26  ;;  %v286_v54 = vmul.f32 %v1054_v34, %v893_v2 }
  0x31   :  { %v280_v49 = vadd.f32 %v276_v30, %v1042_v20  ;;  %s1070_s1 = sld [smem:[#allocation6 + $0x3]]  ;;  %v1075_v50 = vadd.f32 %v142_v48, %v899_v5  ;;  %v296_v57 = vmul.f32 %v1061_v41, %v897_v4  ;;  %v1080_v18 = vstv %s1014_s28 }
  0x32   :  { %v214_v63 = vadd.f32 %v210_v55, %v204_v40  ;;  %s1082_s8 = sld [smem:[#allocation2 + $0x24]]  ;;  %v215_v26 = vadd.f32 %v211_v58, %v205_v45  ;;  %v1085_v30 = vstv %s1027_s29  ;;  %v281_v24 = vadd.f32 %v277_v36, %v1042_v20 }
  0x33   :  { %v1088_v12 = vstv %s1033_s30  ;;  %s733_s9 = sld [smem:[#allocation2 + $0x25]]  ;;  %v287_v48 = vmul.f32 %v1054_v34, %v895_v3  ;;  %v290_v58 = vadd.f32 %v286_v54, %v280_v49  ;;  %v1099_v45 = vmul.f32 %v1080_v18, %v905_v7 }
  0x34   :  { %v224_v55 = vadd.f32 %v220_v61, %v214_v63  ;;  %v411_v40 = vmul.f32 %v1088_v12, %v889_v0  ;;  %v1095_v53 = vstv %s716_s0  ;;  %s734_s10 = sld [smem:[#allocation2 + $0x26]]  ;;  %v225_v52 = vadd.f32 %v221_v15, %v215_v26 }
  0x35   :  { %v421_v36 = vmul.f32 %v1095_v53, %v893_v2  ;;  %v1104_v39 = vstv %s1056_s6  ;;  %s735_s11 = sld [smem:[#allocation2 + $0x27]]  ;;  %v291_v38 = vadd.f32 %v287_v48, %v281_v24  ;;  %v297_v28 = vmul.f32 %v1061_v41, %v913_v10 }
  0x36   :  { %v234_v61 = vadd.f32 %v230_v8, %v224_v55  ;;  %v415_v63 = vadd.f32 %v411_v40, %v1085_v30  ;;  %v431_v15 = vmul.f32 %v1104_v39, %v897_v4  ;;  %v1110_v26 = vstv %s1063_s7  ;;  %s1273_s13 = sld [smem:[#allocation2 + $0x10]] }
  0x37   :  { %v441_v49 = vmul.f32 %v1110_v26, %v905_v7  ;;  %v235_v54 = vadd.f32 %v231_v17, %v225_v52  ;;  %v1117_v23 = vstv %s1070_s1  ;;  %v300_v55 = vadd.f32 %v296_v57, %v290_v58  ;;  %s1283_s14 = sld [smem:[#allocation2 + $0x11]] }
  0x38   :  { %v244_v59 = vadd.f32 %v240_v11, %v234_v61  ;;  %v425_v44 = vadd.f32 %v421_v36, %v415_v63  ;;  %v1120_v8 = vstv %s1082_s8  ;;  %v422_v36 = vmul.f32 %v1095_v53, %v895_v3  ;;  %v91_v61 = vld [vmem:[#allocation11 + $0x42] sm:$0xff]  ;;  %s1293_s15 = sld [smem:[#allocation2 + $0x12]] }
  0x39   :  { %v546_v40 = vmul.f32 %v1120_v8, %v889_v0  ;;  %v1124_v43 = vstv %s733_s9  ;;  %v245_v42 = vadd.f32 %v241_v47, %v235_v54  ;;  %v412_v47 = vmul.f32 %v1088_v12, %v891_v1  ;;  %s1303_s16 = sld [smem:[#allocation2 + $0x13]] }
  0x3a   :  { %v254_v33 = vadd.f32 %v250_v29, %v244_v59  ;;  %v435_v32 = vadd.f32 %v431_v15, %v425_v44  ;;  %v556_v52 = vmul.f32 %v1124_v43, %v893_v2  ;;  %v1128_v17 = vstv %s734_s10  ;;  %v1156_v15 = vld [vmem:[#allocation11 + $0x50] sm:$0xff]  ;;  %s1311_s17 = sld [smem:[#allocation2 + $0x14]] }
  0x3b   :  { %v550_v11 = vadd.f32 %v546_v40, %v1117_v23  ;;  %v566_v24 = vmul.f32 %v1128_v17, %v897_v4  ;;  %v1133_v48 = vstv %s735_s11  ;;  %v255_v57 = vadd.f32 %v251_v60, %v245_v42  ;;  %s1320_s18 = sld [smem:[#allocation2 + $0x15]] }
  0x3c   :  { %1772 = vst [vmem:[#allocation31_spill] sm:$0xff] %v1133_v48  ;;  %v258_v0 = vadd.f32 %v254_v33, %v897_v4  ;;  %v1136_v58 = vadd.f32 %v441_v49, %v435_v32  ;;  %v576_v44 = vmul.f32 %v1133_v48, %v905_v7  ;;  %v301_v59 = vadd.f32 %v297_v28, %v291_v38  ;;  %v1151_v28 = vld [vmem:[#allocation11 + $0x44] sm:$0xff]  ;;  %s1325_s19 = sld [smem:[#allocation2 + $0x16]] }
  0x3d   :  { %v560_v29 = vadd.f32 %v556_v52, %v550_v11  ;;  %v259_v2 = vadd.f32 %v255_v57, %v913_v10  ;;  %v307_v4 = vmul.f32 %v1080_v18, %v923_v14  ;;  %v432_v32 = vmul.f32 %v1104_v39, %v913_v10  ;;  %v1174_v11 = vld [vmem:[#allocation11 + $0x52] sm:$0xff]  ;;  %s1333_s20 = sld [smem:[#allocation2 + $0x17]] }
  0x3e   :  { %1773 = vst [vmem:[#allocation32_spill] sm:$0xff] %v1136_v58  ;;  %v262_v63 = vmax.f32 %v258_v0, 0.0  ;;  %v547_v7 = vmul.f32 %v1120_v8, %v891_v1  ;;  %v416_v42 = vadd.f32 %v412_v47, %v1085_v30  ;;  %v557_v60 = vmul.f32 %v1124_v43, %v895_v3  ;;  %v1235_v58 = vld [vmem:[#allocation11 + $0x4c] sm:$0xf]  ;;  %s1393_s23 = sld [smem:[#allocation2 + $0x1c]] }
  0x3f   :  { %v570_v33 = vadd.f32 %v566_v24, %v560_v29  ;;  %v263_v38 = vmax.f32 %v259_v2, 0.0  ;;  %v567_v1 = vmul.f32 %v1128_v17, %v913_v10  ;;  %v152_v54 = vmul.f32 %v909_v9, %v91_v61  ;;  %1775 = vst [vmem:[#allocation34_spill] sm:$0xff] %v1174_v11  ;;  %v1176_v24 = vld [vmem:[#allocation11 + $0x54] sm:$0xff]  ;;  %s1399_s24 = sld [smem:[#allocation2 + $0x1d]] }
  0x40   :  { %267 = vst.msk [vmem:[%s1715_s5] sm:$0xff] %vm266_vm0, %v262_v63  ;;  %v551_v49 = vadd.f32 %v547_v7, %v1117_v23  ;;  %v426_v3 = vadd.f32 %v422_v36, %v416_v42  ;;  %v442_v52 = vmul.f32 %v1110_v26, %v923_v14  ;;  %v162_v10 = vmul.f32 %v919_v13, %v1151_v28  ;;  %v1192_v7 = vld [vmem:[#allocation11 + $0x62] sm:$0xff]  ;;  %s1405_s25 = sld [smem:[#allocation2 + $0x1e]] }
  0x41   :  { %v1166_v40 = vadd.f32 %v576_v44, %v570_v33  ;;  %269 = vst.msk [vmem:[%s1715_s5 + $0x8] sm:$0xf] %vm268_vm1, %v263_v38  ;;  %v577_v0 = vmul.f32 %v1133_v48, %v923_v14  ;;  %v1182_v44 = vld [vmem:[#allocation11 + $0x60] sm:$0xff]  ;;  %v156_v29 = vadd.f32 %v152_v54, %v1075_v50  ;;  %v172_v2 = vmul.f32 %v932_v19, %v1156_v15  ;;  %s1415_s26 = sld [smem:[#allocation2 + $0x1f]] }
  0x42   :  { %1776 = vst [vmem:[#allocation35_spill] sm:$0xff] %v1176_v24  ;;  %v561_v57 = vadd.f32 %v557_v60, %v551_v49  ;;  %v1188_v47 = vadd.f32 %v1099_v45, %v300_v55  ;;  %v1190_v36 = vadd.f32 %v307_v4, %v301_v59  ;;  %v436_v63 = vadd.f32 %v432_v32, %v426_v3  ;;  %v1194_v33 = vld [vmem:[#allocation11 + $0x64] sm:$0xff]  ;;  %v1202_v49 = vld [vmem:[#allocation11 + $0x70] sm:$0xff]  ;;  %s1420_s27 = sld [smem:[#allocation2 + $0x20]] }
  0x43   :  { %1774 = vst [vmem:[#allocation33_spill] sm:$0xff] %v1166_v40  ;;  %v166_v42 = vadd.f32 %v162_v10, %v156_v29  ;;  %v182_v14 = vmul.f32 %v939_v22, %v1174_v11  ;;  %v192_v50 = vmul.f32 %v949_v27, %v1176_v24  ;;  %v202_v45 = vmul.f32 %v966_v35, %v1182_v44  ;;  %v1221_v29 = vld [vmem:[#allocation11 + $0x48] sm:$0xf]  ;;  %s1426_s28 = sld [smem:[#allocation2 + $0x21]] }
  0x44   :  { %1777 = vst [vmem:[#allocation36_spill] sm:$0xff] %v1182_v44  ;;  %v571_v38 = vadd.f32 %v567_v1, %v561_v57  ;;  %v1200_v60 = vadd.f32 %v442_v52, %v436_v63  ;;  %v278_v55 = vmul.f32 %v1045_v21, %v957_v31  ;;  %v288_v59 = vmul.f32 %v1054_v34, %v91_v61  ;;  %v1250_v44 = vld [vmem:[#allocation11 + $0x58] sm:$0xf]  ;;  %s1430_s29 = sld [smem:[#allocation2 + $0x22]] }
  0x45   :  { %1778 = vst [vmem:[#allocation37_spill] sm:$0xff] %v1192_v7  ;;  %v176_v32 = vadd.f32 %v172_v2, %v166_v42  ;;  %v212_v1 = vmul.f32 %v971_v37, %v1192_v7  ;;  %v222_v54 = vmul.f32 %v990_v46, %v1194_v33  ;;  %v298_v52 = vmul.f32 %v1061_v41, %v1151_v28  ;;  %s1440_s6 = sld [smem:[#allocation2 + $0x23]] }
  0x46   :  { %1779 = vst [vmem:[#allocation38_spill] sm:$0xff] %v1194_v33  ;;  %v1209_v4 = vadd.f32 %v577_v0, %v571_v38  ;;  %v282_v3 = vadd.f32 %v278_v55, %v1042_v20  ;;  %v413_v10 = vmul.f32 %v1088_v12, %v957_v31  ;;  %v423_v57 = vmul.f32 %v1095_v53, %v91_v61  ;;  %v1223_v0 = vld [vmem:[#allocation11 + $0x4a] sm:$0xf]  ;;  %s1510_s10 = sld [smem:[#allocation2 + $0x28]] }
  0x47   :  { %1780 = vst [vmem:[#allocation39_spill] sm:$0xff] %v1200_v60  ;;  %v186_v2 = vadd.f32 %v182_v14, %v176_v32  ;;  %v232_v63 = vmul.f32 %v1001_v51, %v1202_v49  ;;  %v548_v38 = vmul.f32 %v1120_v8, %v957_v31  ;;  %v558_v42 = vmul.f32 %v1124_v43, %v91_v61  ;;  %v1237_v14 = vld [vmem:[#allocation11 + $0x72] sm:$0xff]  ;;  %s1514_s11 = sld [smem:[#allocation2 + $0x29]] }
  0x48   :  { %1781 = vst [vmem:[#allocation40_spill] sm:$0xff] %v1202_v49  ;;  %v292_v55 = vadd.f32 %v288_v59, %v282_v3  ;;  %v433_v40 = vmul.f32 %v1104_v39, %v1151_v28  ;;  %v568_v60 = vmul.f32 %v1128_v17, %v1151_v28  ;;  %v1239_v32 = vld [vmem:[#allocation11 + $0x74] sm:$0xff]  ;;  %v143_v61 = vmul.f32 %v901_v6, %v1221_v29  ;;  %v1256_v6 = vld [vmem:[#allocation11 + $0x68] sm:$0xf]  ;;  %s1522_s12 = sld [smem:[#allocation2 + $0x2a]] }
  0x49   :  { %1782 = vst [vmem:[#allocation41_spill] sm:$0xff] %v1209_v4  ;;  %v417_v4 = vadd.f32 %v413_v10, %v1085_v30  ;;  %v196_v49 = vadd.f32 %v192_v50, %v186_v2  ;;  %v552_v31 = vadd.f32 %v548_v38, %v1117_v23  ;;  %v153_v59 = vmul.f32 %v909_v9, %v1223_v0  ;;  %v1252_v2 = vld [vmem:[#allocation11 + $0x5a] sm:$0xf]  ;;  %s1533_s4 = sld [smem:[#allocation2 + $0x2b]] }
  0x4a   :  { %v302_v3 = vadd.f32 %v298_v52, %v292_v55  ;;  %v308_v10 = vmul.f32 %v1080_v18, %v1156_v15  ;;  %v578_v7 = vmul.f32 %v1133_v48, %v1156_v15  ;;  %1783 = vst [vmem:[#allocation42_spill] sm:$0xff] %v1250_v44  ;;  %v1254_v38 = vld [vmem:[#allocation11 + $0x5c] sm:$0xf]  ;;  %v147_v9 = vadd.f32 %v143_v61, %v899_v5  ;;  %v1269_v48 = vld [vmem:[#allocation11 + $0x6c] sm:$0xf] }
  0x4b   :  { %v427_v33 = vadd.f32 %v423_v57, %v417_v4  ;;  %v206_v24 = vadd.f32 %v202_v45, %v196_v49  ;;  %v562_v50 = vadd.f32 %v558_v42, %v552_v31  ;;  %v163_v52 = vmul.f32 %v919_v13, %v1235_v58  ;;  %v1267_v45 = vld [vmem:[#allocation11 + $0x6a] sm:$0xf] }
  0x4c   :  { %v242_v4 = vmul.f32 %v1012_v56, %v1237_v14  ;;  %v252_v57 = vmul.f32 %v1025_v62, %v1239_v32  ;;  %v443_v49 = vmul.f32 %v1110_v26, %v1156_v15  ;;  %v157_v5 = vadd.f32 %v153_v59, %v147_v9 }
  0x4d   :  { %v437_v55 = vadd.f32 %v433_v40, %v427_v33  ;;  %v216_v42 = vadd.f32 %v212_v1, %v206_v24  ;;  %v572_v31 = vadd.f32 %v568_v60, %v562_v50  ;;  %v173_v13 = vmul.f32 %v932_v19, %v1250_v44  ;;  %v1287_v1 = vld [vmem:[#allocation11 + $0x78] sm:$0xf] }
  0x4e   :  { %v1275_v61 = vadd.f32 %v308_v10, %v302_v3  ;;  %v183_v40 = vmul.f32 %v939_v22, %v1252_v2  ;;  %v193_v15 = vmul.f32 %v949_v27, %v1254_v38  ;;  %v203_v24 = vmul.f32 %v966_v35, %v1256_v6  ;;  %v1289_v19 = vld [vmem:[#allocation11 + $0x7a] sm:$0xf] }
  0x4f   :  { %v226_v33 = vadd.f32 %v222_v54, %v216_v42  ;;  %v1285_v60 = vadd.f32 %v578_v7, %v572_v31  ;;  %v167_v59 = vadd.f32 %v163_v52, %v157_v5  ;;  %v213_v3 = vmul.f32 %v971_v37, %v1267_v45  ;;  %v1305_v10 = vld [vmem:[#allocation11 + $0x7c] sm:$0xf] }
  0x50   :  { %v1295_v22 = vadd.f32 %v443_v49, %v437_v55  ;;  %v223_v27 = vmul.f32 %v990_v46, %v1269_v48  ;;  %v279_v35 = vmul.f32 %v1045_v21, %v1221_v29  ;;  %v289_v7 = vmul.f32 %v1054_v34, %v1223_v0 }
  0x51   :  { %1784 = vst [vmem:[#allocation43_spill] sm:$0xff] %v1285_v60  ;;  %v236_v54 = vadd.f32 %v232_v63, %v226_v33  ;;  %v177_v50 = vadd.f32 %v173_v13, %v167_v59  ;;  %v414_v37 = vmul.f32 %v1088_v12, %v1221_v29  ;;  %v424_v9 = vmul.f32 %v1095_v53, %v1223_v0 }
  0x52   :  { %1785 = vst [vmem:[#allocation44_spill] sm:$0xff] %v1295_v22  ;;  %v233_v46 = vmul.f32 %v1001_v51, %v1287_v1  ;;  %v243_v21 = vmul.f32 %v1012_v56, %v1289_v19  ;;  %v283_v34 = vadd.f32 %v279_v35, %v1042_v20  ;;  %v549_v63 = vmul.f32 %v1120_v8, %v1221_v29 }
  0x53   :  { %v246_v12 = vadd.f32 %v242_v4, %v236_v54  ;;  %v187_v52 = vadd.f32 %v183_v40, %v177_v50  ;;  %v299_v53 = vmul.f32 %v1061_v41, %v1235_v58  ;;  %v418_v55 = vadd.f32 %v414_v37, %v1085_v30  ;;  %v1789_v54 = vld [vmem:[#allocation20_spill] sm:$0xff] }
  0x54   :  { %v253_v51 = vmul.f32 %v1025_v62, %v1305_v10  ;;  %v293_v56 = vadd.f32 %v289_v7, %v283_v34  ;;  %v309_v20 = vmul.f32 %v1080_v18, %v1250_v44  ;;  %v434_v8 = vmul.f32 %v1104_v39, %v1235_v58 }
  0x55   :  { %v256_v29 = vadd.f32 %v252_v57, %v246_v12  ;;  %v197_v4 = vadd.f32 %v193_v15, %v187_v52  ;;  %v428_v41 = vadd.f32 %v424_v9, %v418_v55  ;;  %v1336_v49 = vstv %s1273_s13  ;;  %v1790_v9 = vld [vmem:[#allocation23_spill] sm:$0xff]  ;;  %v1792_v55 = vld [vmem:[#allocation24_spill] sm:$0xff]  ;;  %s1540_s13 = sld [smem:[#allocation2 + $0x2c]] }
  0x56   :  { %v553_v30 = vadd.f32 %v549_v63, %v1117_v23  ;;  %v559_v62 = vmul.f32 %v1124_v43, %v1223_v0  ;;  %v316_v42 = vmul.f32 %v1336_v49, %v927_v16  ;;  %v1344_v18 = vstv %s1283_s14  ;;  %s1546_s14 = sld [smem:[#allocation2 + $0x2d]] }
  0x57   :  { %v260_v39 = vadd.f32 %v256_v29, %v1151_v28  ;;  %v207_v31 = vadd.f32 %v203_v24, %v197_v4  ;;  %v303_v57 = vadd.f32 %v299_v53, %v293_v56  ;;  %v326_v5 = vmul.f32 %v1344_v18, %v947_v25  ;;  %v1787_v24 = vld [vmem:[#allocation19_spill] sm:$0xff] }
  0x58   :  { %v444_v23 = vmul.f32 %v1110_v26, %v1250_v44  ;;  %v1353_v43 = vmul.f32 %v1128_v17, %v1235_v58  ;;  %v320_v0 = vadd.f32 %v316_v42, %v1188_v47  ;;  %v1357_v13 = vstv %s1293_s15  ;;  %v1806_v44 = vld [vmem:[#allocation38_spill] sm:$0xff] }
  0x59   :  { %v264_v40 = vmax.f32 %v260_v39, 0.0  ;;  %v217_v28 = vadd.f32 %v213_v3, %v207_v31  ;;  %v438_v15 = vadd.f32 %v434_v8, %v428_v41  ;;  %v336_v33 = vmul.f32 %v1357_v13, %v1787_v24  ;;  %v1793_v8 = vld [vmem:[#allocation17_spill] sm:$0xff]  ;;  %v1795_v41 = vld [vmem:[#allocation28_spill] sm:$0xff] }
  0x5a   :  { %1786 = vst [vmem:[#allocation45_spill] sm:$0xff] %v1353_v43  ;;  %v1361_v59 = vadd.f32 %v559_v62, %v553_v30  ;;  %v330_v26 = vadd.f32 %v326_v5, %v320_v0  ;;  %v345_v35 = vstv %s1303_s16  ;;  %v355_v7 = vstv %s1311_s17  ;;  %v1796_v62 = vld [vmem:[#allocation18_spill] sm:$0xff]  ;;  %v1797_v31 = vld [vmem:[#allocation21_spill] sm:$0xff]  ;;  %v1804_v43 = vld [vmem:[#allocation36_spill] sm:$0xff]  ;;  %s1571_s17 = sld [smem:[#allocation2 + $0x2e]] }
  0x5b   :  { %270 = vst.msk [vmem:[%s1715_s5 + $0x40] sm:$0xff] %vm266_vm0, %v264_v40  ;;  %v227_v17 = vadd.f32 %v223_v27, %v217_v28  ;;  %v313_v47 = vadd.f32 %v309_v20, %v303_v57  ;;  %v346_v50 = vmul.f32 %v345_v35, %v1789_v54  ;;  %v365_v37 = vstv %s1320_s18  ;;  %v1794_v20 = vld [vmem:[#allocation25_spill] sm:$0xff]  ;;  %v1798_v5 = vld [vmem:[#allocation22_spill] sm:$0xff]  ;;  %s1578_s18 = sld [smem:[#allocation2 + $0x2f]] }
  0x5c   :  { %1788 = vst [vmem:[#allocation19_spill] sm:$0xff] %v1361_v59  ;;  %v340_v3 = vadd.f32 %v336_v33, %v330_v26  ;;  %v356_v34 = vmul.f32 %v355_v7, %v1790_v9  ;;  %v1373_v63 = vstv %s1325_s19  ;;  %v1376_v12 = vstv %s1333_s20  ;;  %v1799_v40 = vld [vmem:[#allocation26_spill] sm:$0xff] }
  0x5d   :  { %v237_v52 = vadd.f32 %v233_v46, %v227_v17  ;;  %v1378_v53 = vadd.f32 %v444_v23, %v438_v15  ;;  %v366_v56 = vmul.f32 %v365_v37, %v1792_v55  ;;  %v317_v29 = vmul.f32 %v1336_v49, %v1793_v8  ;;  %v1800_v15 = vld [vmem:[#allocation27_spill] sm:$0xff] }
  0x5e   :  { %v350_v27 = vadd.f32 %v346_v50, %v340_v3  ;;  %v376_v4 = vmul.f32 %v1373_v63, %v1794_v20  ;;  %v386_v30 = vmul.f32 %v1376_v12, %v1795_v41  ;;  %v327_v42 = vmul.f32 %v1344_v18, %v1796_v62  ;;  %v1802_v3 = vld [vmem:[#allocation35_spill] sm:$0xff] }
  0x5f   :  { %1791 = vst [vmem:[#allocation20_spill] sm:$0xff] %v1378_v53  ;;  %v247_v39 = vadd.f32 %v243_v21, %v237_v52  ;;  %v321_v46 = vadd.f32 %v317_v29, %v1190_v36  ;;  %v337_v57 = vmul.f32 %v1357_v13, %v1797_v31  ;;  %v347_v23 = vmul.f32 %v345_v35, %v1798_v5  ;;  %v1801_v36 = vld [vmem:[#allocation29_spill] sm:$0xff]  ;;  %v1803_v29 = vld [vmem:[#allocation30_spill] sm:$0xff] }
  0x60   :  { %v360_v0 = vadd.f32 %v356_v34, %v350_v27  ;;  %v357_v28 = vmul.f32 %v355_v7, %v1799_v40  ;;  %v367_v33 = vmul.f32 %v365_v37, %v1800_v15  ;;  %v318_v26 = vmul.f32 %v1336_v49, %v1174_v11 }
  0x61   :  { %v257_v21 = vadd.f32 %v253_v51, %v247_v39  ;;  %v331_v17 = vadd.f32 %v327_v42, %v321_v46  ;;  %v377_v50 = vmul.f32 %v1373_v63, %v1801_v36  ;;  %v328_v52 = vmul.f32 %v1344_v18, %v1802_v3  ;;  %v1805_v39 = vld [vmem:[#allocation37_spill] sm:$0xff] }
  0x62   :  { %v370_v34 = vadd.f32 %v366_v56, %v360_v0  ;;  %v387_v27 = vmul.f32 %v1376_v12, %v1803_v29  ;;  %v322_v60 = vadd.f32 %v318_v26, %v1275_v61  ;;  %v338_v59 = vmul.f32 %v1357_v13, %v1804_v43  ;;  %v1807_v56 = vld [vmem:[#allocation40_spill] sm:$0xff] }
  0x63   :  { %v261_v51 = vadd.f32 %v257_v21, %v1235_v58  ;;  %v341_v42 = vadd.f32 %v337_v57, %v331_v17  ;;  %v348_v46 = vmul.f32 %v345_v35, %v1805_v39  ;;  %v358_v53 = vmul.f32 %v355_v7, %v1806_v44 }
  0x64   :  { %v380_v22 = vadd.f32 %v376_v4, %v370_v34  ;;  %v332_v11 = vadd.f32 %v328_v52, %v322_v60  ;;  %v368_v0 = vmul.f32 %v365_v37, %v1807_v56  ;;  %v319_v29 = vmul.f32 %v1336_v49, %v1252_v2 }
  0x65   :  { %v265_v61 = vmax.f32 %v261_v51, 0.0  ;;  %v351_v26 = vadd.f32 %v347_v23, %v341_v42  ;;  %v378_v58 = vmul.f32 %v1373_v63, %v1237_v14  ;;  %v329_v57 = vmul.f32 %v1344_v18, %v1254_v38 }
  0x66   :  { %v390_v21 = vadd.f32 %v386_v30, %v380_v22  ;;  %v342_v60 = vadd.f32 %v338_v59, %v332_v11  ;;  %v323_v4 = vadd.f32 %v319_v29, %v313_v47  ;;  %v339_v49 = vmul.f32 %v1357_v13, %v1256_v6 }
  0x67   :  { %271 = vst.msk [vmem:[%s1715_s5 + $0x48] sm:$0xf] %vm268_vm1, %v265_v61  ;;  %v361_v23 = vadd.f32 %v357_v28, %v351_v26  ;;  %v388_v18 = vmul.f32 %v1376_v12, %v1239_v32  ;;  %v349_v22 = vmul.f32 %v345_v35, %v1267_v45  ;;  %v359_v11 = vmul.f32 %v355_v7, %v1269_v48  ;;  %v1808_v26 = vld [vmem:[#allocation32_spill] sm:$0xff] }
  0x68   :  { %v394_v13 = vadd.f32 %v390_v21, %v947_v25  ;;  %v352_v59 = vadd.f32 %v348_v46, %v342_v60  ;;  %v333_v47 = vadd.f32 %v329_v57, %v323_v4  ;;  %v369_v30 = vmul.f32 %v365_v37, %v1287_v1 }
  0x69   :  { %v371_v17 = vadd.f32 %v367_v33, %v361_v23  ;;  %v1445_v52 = vstv %s1393_s23  ;;  %v1448_v28 = vstv %s1399_s24  ;;  %v1451_v34 = vstv %s1405_s25 }
  0x6a   :  { %v398_v35 = vmax.f32 %v394_v13, 0.0  ;;  %v362_v7 = vadd.f32 %v358_v53, %v352_v59  ;;  %v343_v29 = vadd.f32 %v339_v49, %v333_v47  ;;  %v451_v51 = vmul.f32 %v1445_v52, %v927_v16 }
  0x6b   :  { %v381_v42 = vadd.f32 %v377_v50, %v371_v17  ;;  %v379_v37 = vmul.f32 %v1373_v63, %v1289_v19  ;;  %v461_v33 = vmul.f32 %v1448_v28, %v947_v25  ;;  %v1460_v46 = vstv %s1415_s26 }
  0x6c   :  { %710 = vst.msk [vmem:[%s1715_s5 + $0x10] sm:$0xff] %vm266_vm0, %v398_v35  ;;  %v372_v53 = vadd.f32 %v368_v0, %v362_v7  ;;  %v353_v61 = vadd.f32 %v349_v22, %v343_v29  ;;  %v455_v57 = vadd.f32 %v451_v51, %v1808_v26  ;;  %v471_v50 = vmul.f32 %v1451_v34, %v1787_v24 }
  0x6d   :  { %v391_v21 = vadd.f32 %v387_v27, %v381_v42  ;;  %v481_v63 = vmul.f32 %v1460_v46, %v1789_v54  ;;  %v1472_v60 = vstv %s1420_s27  ;;  %v1475_v4 = vstv %s1426_s28 }
  0x6e   :  { %v382_v49 = vadd.f32 %v378_v58, %v372_v53  ;;  %v363_v23 = vadd.f32 %v359_v11, %v353_v61  ;;  %v465_v13 = vadd.f32 %v461_v33, %v455_v57  ;;  %v1478_v59 = vstv %s1430_s29 }
  0x6f   :  { %v395_v0 = vadd.f32 %v391_v21, %v1796_v62  ;;  %v389_v22 = vmul.f32 %v1376_v12, %v1305_v10  ;;  %v491_v27 = vmul.f32 %v1472_v60, %v1790_v9  ;;  %v1486_v47 = vstv %s1440_s6 }
  0x70   :  { %v392_v17 = vadd.f32 %v388_v18, %v382_v49  ;;  %v373_v35 = vadd.f32 %v369_v30, %v363_v23  ;;  %v475_v7 = vadd.f32 %v471_v50, %v465_v13  ;;  %v501_v58 = vmul.f32 %v1475_v4, %v1792_v55  ;;  %v1809_v30 = vld [vmem:[#allocation39_spill] sm:$0xff] }
  0x71   :  { %v399_v11 = vmax.f32 %v395_v0, 0.0  ;;  %v511_v29 = vmul.f32 %v1478_v59, %v1794_v20  ;;  %v452_v51 = vmul.f32 %v1445_v52, %v1793_v8  ;;  %v462_v12 = vmul.f32 %v1448_v28, %v1796_v62  ;;  %v1810_v0 = vld [vmem:[#allocation34_spill] sm:$0xff] }
  0x72   :  { %v396_v42 = vadd.f32 %v392_v17, %v1802_v3  ;;  %v383_v33 = vadd.f32 %v379_v37, %v373_v35  ;;  %v485_v53 = vadd.f32 %v481_v63, %v475_v7  ;;  %v521_v18 = vmul.f32 %v1486_v47, %v1795_v41  ;;  %v1811_v7 = vld [vmem:[#allocation30_spill] sm:$0xff] }
  0x73   :  { %711 = vst.msk [vmem:[%s1715_s5 + $0x18] sm:$0xf] %vm268_vm1, %v399_v11  ;;  %v456_v61 = vadd.f32 %v452_v51, %v1809_v30  ;;  %v472_v26 = vmul.f32 %v1451_v34, %v1797_v31  ;;  %v482_v57 = vmul.f32 %v1460_v46, %v1798_v5  ;;  %v492_v37 = vmul.f32 %v1472_v60, %v1799_v40 }
  0x74   :  { %v400_v50 = vmax.f32 %v396_v42, 0.0  ;;  %v393_v21 = vadd.f32 %v389_v22, %v383_v33  ;;  %v495_v63 = vadd.f32 %v491_v27, %v485_v53  ;;  %v502_v49 = vmul.f32 %v1475_v4, %v1800_v15  ;;  %v1812_v42 = vld [vmem:[#allocation44_spill] sm:$0xff] }
  0x75   :  { %v466_v23 = vadd.f32 %v462_v12, %v456_v61  ;;  %v512_v13 = vmul.f32 %v1478_v59, %v1801_v36  ;;  %v453_v17 = vmul.f32 %v1445_v52, %v1810_v0  ;;  %v463_v35 = vmul.f32 %v1448_v28, %v1802_v3 }
  0x76   :  { %712 = vst.msk [vmem:[%s1715_s5 + $0x50] sm:$0xff] %vm266_vm0, %v400_v50  ;;  %v397_v22 = vadd.f32 %v393_v21, %v1254_v38  ;;  %v505_v27 = vadd.f32 %v501_v58, %v495_v63  ;;  %v522_v11 = vmul.f32 %v1486_v47, %v1811_v7  ;;  %v473_v51 = vmul.f32 %v1451_v34, %v1804_v43 }
  0x77   :  { %v476_v12 = vadd.f32 %v472_v26, %v466_v23  ;;  %v457_v33 = vadd.f32 %v453_v17, %v1812_v42  ;;  %v483_v53 = vmul.f32 %v1460_v46, %v1805_v39  ;;  %v493_v30 = vmul.f32 %v1472_v60, %v1806_v44 }
  0x78   :  { %v401_v58 = vmax.f32 %v397_v22, 0.0  ;;  %v515_v61 = vadd.f32 %v511_v29, %v505_v27  ;;  %v503_v50 = vmul.f32 %v1475_v4, %v1807_v56  ;;  %v454_v21 = vmul.f32 %v1445_v52, %v1252_v2  ;;  %v1813_v22 = vld [vmem:[#allocation20_spill] sm:$0xff] }
  0x79   :  { %v486_v26 = vadd.f32 %v482_v57, %v476_v12  ;;  %v467_v63 = vadd.f32 %v463_v35, %v457_v33  ;;  %v513_v23 = vmul.f32 %v1478_v59, %v1237_v14  ;;  %v464_v17 = vmul.f32 %v1448_v28, %v1254_v38 }
  0x7a   :  { %713 = vst.msk [vmem:[%s1715_s5 + $0x58] sm:$0xf] %vm268_vm1, %v401_v58  ;;  %v525_v29 = vadd.f32 %v521_v18, %v515_v61  ;;  %v523_v52 = vmul.f32 %v1486_v47, %v1239_v32  ;;  %v458_v57 = vadd.f32 %v454_v21, %v1813_v22  ;;  %v474_v35 = vmul.f32 %v1451_v34, %v1256_v6 }
  0x7b   :  { %v496_v27 = vadd.f32 %v492_v37, %v486_v26  ;;  %v477_v12 = vadd.f32 %v473_v51, %v467_v63  ;;  %v484_v28 = vmul.f32 %v1460_v46, %v1267_v45  ;;  %v494_v42 = vmul.f32 %v1472_v60, %v1269_v48 }
  0x7c   :  { %v529_v18 = vadd.f32 %v525_v29, %v1790_v9  ;;  %v468_v33 = vadd.f32 %v464_v17, %v458_v57  ;;  %v504_v58 = vmul.f32 %v1475_v4, %v1287_v1  ;;  %v1569_v61 = vstv %s1510_s10 }
  0x7d   :  { %v506_v34 = vadd.f32 %v502_v49, %v496_v27  ;;  %v487_v37 = vadd.f32 %v483_v53, %v477_v12  ;;  %v586_v46 = vmul.f32 %v1569_v61, %v927_v16  ;;  %v1576_v51 = vstv %s1514_s11  ;;  %v1814_v49 = vld [vmem:[#allocation33_spill] sm:$0xff] }
  0x7e   :  { %v533_v60 = vmax.f32 %v529_v18, 0.0  ;;  %v478_v21 = vadd.f32 %v474_v35, %v468_v33  ;;  %v596_v4 = vmul.f32 %v1576_v51, %v947_v25  ;;  %v1583_v26 = vstv %s1522_s12 }
  0x7f   :  { %v516_v63 = vadd.f32 %v512_v13, %v506_v34  ;;  %v497_v17 = vadd.f32 %v493_v30, %v487_v37  ;;  %v590_v29 = vadd.f32 %v586_v46, %v1814_v49  ;;  %v606_v53 = vmul.f32 %v1583_v26, %v1787_v24  ;;  %v1818_v49 = vld [vmem:[#allocation19_spill] sm:$0xff] }
  0x80   :  { %727 = vst.msk [vmem:[%s1715_s5 + $0x20] sm:$0xff] %vm266_vm0, %v533_v60  ;;  %v488_v16 = vadd.f32 %v484_v28, %v478_v21  ;;  %v1593_v22 = vstv %s1533_s4  ;;  %v1596_v57 = vstv %s1540_s13  ;;  %v1599_v25 = vstv %s1546_s14  ;;  %v1815_v21 = vld [vmem:[#allocation42_spill] sm:$0xff] }
  0x81   :  { %v526_v13 = vadd.f32 %v522_v11, %v516_v63  ;;  %v507_v30 = vadd.f32 %v503_v50, %v497_v17  ;;  %v600_v35 = vadd.f32 %v596_v4, %v590_v29  ;;  %v616_v27 = vmul.f32 %v1593_v22, %v1789_v54  ;;  %v1817_v17 = vld [vmem:[#allocation41_spill] sm:$0xff] }
  0x82   :  { %v498_v24 = vadd.f32 %v494_v42, %v488_v16  ;;  %v514_v12 = vmul.f32 %v1478_v59, %v1289_v19  ;;  %v524_v28 = vmul.f32 %v1486_v47, %v1305_v10  ;;  %v626_v18 = vmul.f32 %v1596_v57, %v1790_v9  ;;  %v1819_v29 = vld [vmem:[#allocation45_spill] sm:$0xff] }
  0x83   :  { %v530_v33 = vadd.f32 %v526_v13, %v1799_v40  ;;  %v517_v34 = vadd.f32 %v513_v23, %v507_v30  ;;  %v610_v11 = vadd.f32 %v606_v53, %v600_v35  ;;  %v636_v50 = vmul.f32 %v1599_v25, %v1792_v55  ;;  %v1816_v23 = vld [vmem:[#allocation31_spill] sm:$0xff] }
  0x84   :  { %v508_v37 = vadd.f32 %v504_v58, %v498_v24  ;;  %v1613_v54 = vstv %s1571_s17  ;;  %v587_v42 = vmul.f32 %v1569_v61, %v1793_v8  ;;  %v597_v59 = vmul.f32 %v1576_v51, %v1796_v62 }
  0x85   :  { %v534_v47 = vmax.f32 %v530_v33, 0.0  ;;  %v527_v46 = vadd.f32 %v523_v52, %v517_v34  ;;  %v620_v60 = vadd.f32 %v616_v27, %v610_v11  ;;  %v1620_v9 = vstv %s1578_s18  ;;  %v1820_v34 = vld [vmem:[#allocation43_spill] sm:$0xff] }
  0x86   :  { %v579_v4 = vmul.f32 %v1816_v23, %v1815_v21  ;;  %v518_v63 = vadd.f32 %v514_v12, %v508_v37  ;;  %v591_v55 = vadd.f32 %v587_v42, %v1817_v17  ;;  %v607_v58 = vmul.f32 %v1583_v26, %v1797_v31 }
  0x87   :  { %v573_v8 = vadd.f32 %v1819_v29, %v1818_v49  ;;  %728 = vst.msk [vmem:[%s1715_s5 + $0x28] sm:$0xf] %vm268_vm1, %v534_v47  ;;  %v531_v62 = vadd.f32 %v527_v46, %v1806_v44  ;;  %v630_v52 = vadd.f32 %v626_v18, %v620_v60  ;;  %v646_v53 = vmul.f32 %v1613_v54, %v1794_v20 }
  0x88   :  { %v528_v16 = vadd.f32 %v524_v28, %v518_v63  ;;  %v656_v13 = vmul.f32 %v1620_v9, %v1795_v41  ;;  %v601_v30 = vadd.f32 %v597_v59, %v591_v55  ;;  %v617_v31 = vmul.f32 %v1593_v22, %v1798_v5 }
  0x89   :  { %v535_v35 = vmax.f32 %v531_v62, 0.0  ;;  %v640_v27 = vadd.f32 %v636_v50, %v630_v52  ;;  %v588_v24 = vmul.f32 %v1569_v61, %v1810_v0  ;;  %v598_v12 = vmul.f32 %v1576_v51, %v1802_v3 }
  0x8a   :  { %v532_v18 = vadd.f32 %v528_v16, %v1269_v48  ;;  %v611_v33 = vadd.f32 %v607_v58, %v601_v30  ;;  %v627_v20 = vmul.f32 %v1596_v57, %v1799_v40  ;;  %v583_v28 = vadd.f32 %v579_v4, %v573_v8 }
  0x8b   :  { %729 = vst.msk [vmem:[%s1715_s5 + $0x60] sm:$0xff] %vm266_vm0, %v535_v35  ;;  %v650_v5 = vadd.f32 %v646_v53, %v640_v27  ;;  %v592_v11 = vadd.f32 %v588_v24, %v1820_v34  ;;  %v608_v0 = vmul.f32 %v1583_v26, %v1804_v43  ;;  %v637_v37 = vmul.f32 %v1599_v25, %v1800_v15 }
  0x8c   :  { %v536_v50 = vmax.f32 %v532_v18, 0.0  ;;  %v621_v3 = vadd.f32 %v617_v31, %v611_v33  ;;  %v618_v40 = vmul.f32 %v1593_v22, %v1805_v39  ;;  %v589_v47 = vmul.f32 %v1569_v61, %v1252_v2 }
  0x8d   :  { %v660_v42 = vadd.f32 %v656_v13, %v650_v5  ;;  %v602_v59 = vadd.f32 %v598_v12, %v592_v11  ;;  %v599_v46 = vmul.f32 %v1576_v51, %v1254_v38  ;;  %v647_v15 = vmul.f32 %v1613_v54, %v1801_v36 }
  0x8e   :  { %730 = vst.msk [vmem:[%s1715_s5 + $0x68] sm:$0xf] %vm268_vm1, %v536_v50  ;;  %v631_v43 = vadd.f32 %v627_v20, %v621_v3  ;;  %v628_v39 = vmul.f32 %v1596_v57, %v1806_v44  ;;  %v593_v23 = vadd.f32 %v589_v47, %v583_v28  ;;  %v609_v2 = vmul.f32 %v1583_v26, %v1256_v6 }
  0x8f   :  { %v664_v60 = vadd.f32 %v660_v42, %v1795_v41  ;;  %v612_v21 = vadd.f32 %v608_v0, %v602_v59  ;;  %v657_v61 = vmul.f32 %v1620_v9, %v1811_v7  ;;  %v638_v51 = vmul.f32 %v1599_v25, %v1807_v56 }
  0x90   :  { %v641_v38 = vadd.f32 %v637_v37, %v631_v43  ;;  %v603_v36 = vadd.f32 %v599_v46, %v593_v23  ;;  %v619_v44 = vmul.f32 %v1593_v22, %v1267_v45  ;;  %v648_v41 = vmul.f32 %v1613_v54, %v1237_v14 }
  0x91   :  { %v668_v4 = vmax.f32 %v664_v60, 0.0  ;;  %v622_v63 = vadd.f32 %v618_v40, %v612_v21  ;;  %v629_v56 = vmul.f32 %v1596_v57, %v1269_v48  ;;  %v658_v49 = vmul.f32 %v1620_v9, %v1239_v32 }
  0x92   :  { %v651_v17 = vadd.f32 %v647_v15, %v641_v38  ;;  %v613_v26 = vadd.f32 %v609_v2, %v603_v36  ;;  %v639_v22 = vmul.f32 %v1599_v25, %v1287_v1  ;;  %v649_v14 = vmul.f32 %v1613_v54, %v1289_v19 }
  0x93   :  { %744 = vst.msk [vmem:[%s1715_s5 + $0x30] sm:$0xff] %vm266_vm0, %v668_v4  ;;  %v632_v6 = vadd.f32 %v628_v39, %v622_v63  ;;  %v659_v48 = vmul.f32 %v1620_v9, %v1305_v10 }
  0x94   :  { %v661_v55 = vadd.f32 %v657_v61, %v651_v17  ;;  %v623_v45 = vadd.f32 %v619_v44, %v613_v26 }
  0x95   :  { %v642_v58 = vadd.f32 %v638_v51, %v632_v6 }
  0x96   :  { %v665_v29 = vadd.f32 %v661_v55, %v1811_v7  ;;  %v633_v62 = vadd.f32 %v629_v56, %v623_v45 }
  0x97   :  { %v652_v8 = vadd.f32 %v648_v41, %v642_v58 }
  0x98   :  { %v669_v52 = vmax.f32 %v665_v29, 0.0  ;;  %v643_v16 = vadd.f32 %v639_v22, %v633_v62 }
  0x99   :  { %v662_v53 = vadd.f32 %v658_v49, %v652_v8 }
  0x9a   :  { %745 = vst.msk [vmem:[%s1715_s5 + $0x38] sm:$0xf] %vm268_vm1, %v669_v52  ;;  %v653_v57 = vadd.f32 %v649_v14, %v643_v16 }
  0x9b   :  { %v666_v1 = vadd.f32 %v662_v53, %v1239_v32 }
  0x9c   :  { %v663_v25 = vadd.f32 %v659_v48, %v653_v57 }
  0x9d   :  { %v670_v7 = vmax.f32 %v666_v1, 0.0 }
  0x9e   :  { %v667_v19 = vadd.f32 %v663_v25, %v1305_v10 }
  0x9f   :  { %746 = vst.msk [vmem:[%s1715_s5 + $0x70] sm:$0xff] %vm266_vm0, %v670_v7 }
  0xa0   :  { %v671_v54 = vmax.f32 %v667_v19, 0.0 }
  0xa2   :  { %747 = vst.msk [vmem:[%s1715_s5 + $0x78] sm:$0xf] %vm268_vm1, %v671_v54 }
  0xa3   :  { %681 = vsyncpa [#allocation3], 1 }
  0xa4   :  { %682 = vsyncpa [#allocation4], 1 }
  0xa5   :  { %683 = vsyncpa [#allocation7], 1 }
  0xa6   :  { %684 = vsyncpa [#allocation5], 1 }
  0xa7   :  { %685 = vsyncpa [#allocation10], 1 }

</bundles_post_ra>
